<compile_context>
chip_gen: v7x
topology: tpu7x:2x2x1
jax: 0.10.0
libtpu: 0.0.40
codegen_flags: <defaults>
</compile_context>

<pallas_src>
import numpy as np
import jax
import jax.numpy as jnp
from jax.experimental import pallas as pl
from jax.experimental.pallas import tpu as pltpu

LANES = 128
FC3_OUT = 10


# ----------------------------------------------------------------------------
# The whole-network kernel (runs once per image; grid=(B,))
# ----------------------------------------------------------------------------
def _lenet5_kernel(x_ref, w1_ref, b1_ref, w2_ref, b2_ref,
                   wf1_ref, bf1_ref, wf2_ref, bf2_ref, wf3_ref, bf3_ref,
                   o_ref):
    # x_ref: (1, 4, 7, 32) f32, x[r, i, w] = image[4*i + r, w] (w >= 28 is 0).
    img = x_ref[0]                                   # (4, 7, 32) f32

    # ---------------- conv1 + bias + ReLU + 2x2/2 maxpool --------------------
    # LHS rows: 4 blocks of 6 = (row-parity p, pool offset dh) x hp1-half
    # LHS cols: (kh, image column w)  -> K = 5*32 = 160
    blocks = []
    for p in range(2):                               # output-row parity of y1
        for dh in range(2):                          # pool offset along H
            chunks = []
            for kh in range(5):
                t = 2 * p + dh + kh                  # image row = 4*i + t
                chunks.append(img[t & 3, (t >> 2):(t >> 2) + 6, :])  # (6, 32)
            blocks.append(jnp.concatenate(chunks, axis=1))           # (6, 160)
    lhs1 = jnp.concatenate(blocks, axis=0).astype(jnp.bfloat16)      # (24, 160)
    c1 = jnp.dot(lhs1, w1_ref[...], preferred_element_type=jnp.float32)  # (24, 256)

    # pool: max over dh (row blocks), then over dw (128-aligned column halves),
    # THEN one bias add + ReLU (exact: relu is monotone, bias shared).
    b1 = b1_ref[...]
    e0 = jnp.maximum(c1[0:6, :], c1[6:12, :])        # even y1 rows   (6, 256)
    e1 = jnp.maximum(c1[12:18, :], c1[18:24, :])     # odd  y1 rows   (6, 256)
    yP0 = jnp.maximum(jnp.maximum(e0[:, :128], e0[:, 128:]) + b1, 0.0)  # (6, 128)
    yP1 = jnp.maximum(jnp.maximum(e1[:, :128], e1[:, 128:]) + b1, 0.0)  # (6, 128)
    # yP{p}[i, ci*12 + wp1] = y1[2*i + p, wp1, ci]   (ci<6, wp1<12, rest = 0)
    yP = (yP0, yP1)

    # ---------------- conv2 + bias + ReLU + 2x2/2 maxpool --------------------
    # LHS rows: 2 blocks (pool offset dh2) of 4 (hp2); cols: (kh, y1 lane).
    blocks2 = []
    for dh2 in range(2):
        chunks = []
        for kh in range(5):
            s = dh2 + kh
            chunks.append(yP[s & 1][(s >> 1):(s >> 1) + 4, :])        # (4, 128)
        blocks2.append(jnp.concatenate(chunks, axis=1))               # (4, 640)
    lhs2 = jnp.concatenate(blocks2, axis=0).astype(jnp.bfloat16)      # (8, 640)
    c2 = jnp.dot(lhs2, w2_ref[...], preferred_element_type=jnp.float32)  # (8, 256)

    ph = jnp.maximum(c2[0:4, :], c2[4:8, :])                          # pool dh2
    z = jnp.maximum(jnp.maximum(ph[:, :128], ph[:, 128:]) + b2_ref[...], 0.0)
    # z: (4, 128) f32, z[hp2, co2*4 + wp2]  (co2<16, wp2<4, rest = 0)

    # ---------------- fc1 + ReLU -> fc2 + ReLU -> fc3 ------------------------
    # "Flatten" is just a lane concat of the 4 rows; wf1 is packed to match.
    zflat = jnp.concatenate([z[0:1, :], z[1:2, :], z[2:3, :], z[3:4, :]],
                            axis=1).astype(jnp.bfloat16)              # (1, 512)
    h = jnp.dot(zflat, wf1_ref[...], preferred_element_type=jnp.float32)
    h = jnp.maximum(h + bf1_ref[...], 0.0).astype(jnp.bfloat16)
    h = jnp.dot(h, wf2_ref[...], preferred_element_type=jnp.float32)
    h = jnp.maximum(h + bf2_ref[...], 0.0).astype(jnp.bfloat16)
    h = jnp.dot(h, wf3_ref[...], preferred_element_type=jnp.float32)
    o_ref[...] = jnp.reshape(h + bf3_ref[...], (1, 1, LANES))         # f32 logits


# ----------------------------------------------------------------------------
# Forward wrapper (one pallas_call; ~4 tiny XLA ops of layout prep)
# ----------------------------------------------------------------------------
def lenet5_forward(x_nchw, pp):
    B = x_nchw.shape[0]
    x = x_nchw.reshape(B, 28, 28).astype(jnp.float32)
    # mod-4 split of image rows (so all in-kernel patch slices are contiguous)
    # and pad width 28 -> 32 for lane alignment of the K chunks.
    x4 = x.reshape(B, 7, 4, 28).transpose(0, 2, 1, 3)                 # (B,4,7,28)
    x4 = jnp.pad(x4, ((0, 0), (0, 0), (0, 0), (0, 4)))                # (B,4,7,32)

    const2 = lambda b: (0, 0)
    out = pl.pallas_call(
        _lenet5_kernel,
        out_shape=jax.ShapeDtypeStruct((B, 1, LANES), jnp.float32),
        grid=(B,),
        in_specs=[
            pl.BlockSpec((1, 4, 7, 32), lambda b: (b, 0, 0, 0)),
            pl.BlockSpec((160, 256), const2),     # conv1 packed weight
            pl.BlockSpec((1, LANES), const2),     # conv1 bias row
            pl.BlockSpec((640, 256), const2),     # conv2 packed weight
            pl.BlockSpec((1, LANES), const2),     # conv2 bias row
            pl.BlockSpec((512, LANES), const2),   # fc1 packed weight
            pl.BlockSpec((1, LANES), const2),
            pl.BlockSpec((LANES, LANES), const2), # fc2
            pl.BlockSpec((1, LANES), const2),
            pl.BlockSpec((LANES, LANES), const2), # fc3
            pl.BlockSpec((1, LANES), const2),
        ],
        out_specs=pl.BlockSpec((1, 1, LANES), lambda b: (b, 0, 0)),
        compiler_params=pltpu.CompilerParams(
            dimension_semantics=("parallel",)),
    )(x4, pp["w1"], pp["b1"], pp["w2"], pp["b2"],
      pp["f1"], pp["bf1"], pp["f2"], pp["bf2"], pp["f3"], pp["bf3"])
    return out.reshape(B, LANES)[:, :FC3_OUT]


# ----------------------------------------------------------------------------
# One-time host-side weight packing (numpy; exact zero-padded repack)
# ----------------------------------------------------------------------------
def prepare_params(params):
    f32 = lambda a: np.asarray(jax.device_get(a), dtype=np.float32)
    w1, b1 = f32(params["conv1_w"]), f32(params["conv1_b"])     # (6,1,5,5), (6,)
    w2, b2 = f32(params["conv2_w"]), f32(params["conv2_b"])     # (16,6,5,5), (16,)
    f1w, f1b = f32(params["fc1_w"]), f32(params["fc1_b"])       # (120,256), (120,)
    f2w, f2b = f32(params["fc2_w"]), f32(params["fc2_b"])       # (84,120), (84,)
    f3w, f3b = f32(params["fc3_w"]), f32(params["fc3_b"])       # (10,84), (10,)

    # conv1: rows (kh, image col w), cols (pw1*128 + ci*12 + wp1).  Banded
    # Toeplitz along w folds kw and the W-direction pool offset into columns.
    W1 = np.zeros((5 * 32, 256), np.float32)
    for kh in range(5):
        for wo1 in range(24):
            wp1, pw1 = wo1 // 2, wo1 % 2
            cols = pw1 * 128 + np.arange(6) * 12 + wp1
            for kw in range(5):
                W1[kh * 32 + wo1 + kw, cols] = w1[:, 0, kh, kw]
    B1 = np.zeros((1, 128), np.float32)
    for ci in range(6):
        B1[0, ci * 12: ci * 12 + 12] = b1[ci]

    # conv2: rows (kh*128 + ci*12 + wp1), cols (pw2*128 + co2*4 + wp2).
    W2 = np.zeros((5 * 128, 256), np.float32)
    for kh in range(5):
        for ci in range(6):
            for wp1 in range(12):
                row = kh * 128 + ci * 12 + wp1
                for wo2 in range(8):
                    kw = wp1 - wo2
                    if 0 <= kw < 5:
                        wp2, pw2 = wo2 // 2, wo2 % 2
                        W2[row, pw2 * 128 + 4 * np.arange(16) + wp2] = w2[:, ci, kh, kw]
    B2 = np.zeros((1, 128), np.float32)
    for co2 in range(16):
        B2[0, co2 * 4: co2 * 4 + 4] = b2[co2]

    # fc1 repacked to consume conv2's pooled layout directly:
    # input lane (hp2*128 + co2*4 + wp2)  <->  PyTorch feature co2*16 + hp2*4 + wp2.
    F1 = np.zeros((4 * 128, 128), np.float32)
    for hp2 in range(4):
        for co2 in range(16):
            for wp2 in range(4):
                F1[hp2 * 128 + co2 * 4 + wp2, :120] = f1w[:, co2 * 16 + hp2 * 4 + wp2]
    BF1 = np.zeros((1, 128), np.float32); BF1[0, :120] = f1b
    F2 = np.zeros((128, 128), np.float32); F2[:120, :84] = f2w.T
    BF2 = np.zeros((1, 128), np.float32); BF2[0, :84] = f2b
    F3 = np.zeros((128, 128), np.float32); F3[:84, :10] = f3w.T
    BF3 = np.zeros((1, 128), np.float32); BF3[0, :10] = f3b

    bf = lambda a: jnp.asarray(a, dtype=jnp.bfloat16)
    fl = lambda a: jnp.asarray(a, dtype=jnp.float32)
    return dict(w1=bf(W1), b1=fl(B1), w2=bf(W2), b2=fl(B2),
                f1=bf(F1), bf1=fl(BF1), f2=bf(F2), bf2=fl(BF2),
                f3=bf(F3), bf3=fl(BF3))


# ----------------------------------------------------------------------------
# Deterministic PyTorch-shaped parameter init (uniform(-1/sqrt(fan_in)))
# ----------------------------------------------------------------------------
def init_params(key):
    ks = jax.random.split(key, 10)

    def u(k, shape, fan_in):
        bound = 1.0 / float(fan_in) ** 0.5
        return jax.random.uniform(k, shape, jnp.float32, -bound, bound)

    return {
        "conv1_w": u(ks[0], (6, 1, 5, 5), 25),
        "conv1_b": u(ks[1], (6,), 25),
        "conv2_w": u(ks[2], (16, 6, 5, 5), 150),
        "conv2_b": u(ks[3], (16,), 150),
        "fc1_w": u(ks[4], (120, 256), 256),
        "fc1_b": u(ks[5], (120,), 256),
        "fc2_w": u(ks[6], (84, 120), 120),
        "fc2_b": u(ks[7], (84,), 120),
        "fc3_w": u(ks[8], (10, 84), 84),
        "fc3_b": u(ks[9], (10,), 84),
    }


if __name__ == "__main__":
    key = jax.random.PRNGKey(0)
    k_params, k_input = jax.random.split(key)

    params = init_params(k_params)
    packed = prepare_params(params)                 # one-time host-side packing

    # LeNet-5 geometry (fc1 = 16*4*4) forces 28x28 single-channel input.
    x = jax.random.normal(k_input, (2, 1, 28, 28), dtype=jnp.float32)

    fwd = jax.jit(lenet5_forward)
    out = jax.block_until_ready(fwd(x, packed))

    assert out.shape == (2, 10), out.shape
    assert out.dtype == jnp.float32, out.dtype
    print("KERNEL_OK")
</pallas_src>

<mosaic_0001>
module attributes {stable_mosaic.version = 11 : i64} {
  func.func @_lenet5_kernel(%arg0: i32, %arg1: memref<1x4x7x32xf32, #tpu.memory_space<vmem>>, %arg2: memref<160x256xbf16, #tpu.memory_space<vmem>>, %arg3: memref<1x128xf32, #tpu.memory_space<vmem>>, %arg4: memref<640x256xbf16, #tpu.memory_space<vmem>>, %arg5: memref<1x128xf32, #tpu.memory_space<vmem>>, %arg6: memref<512x128xbf16, #tpu.memory_space<vmem>>, %arg7: memref<1x128xf32, #tpu.memory_space<vmem>>, %arg8: memref<128x128xbf16, #tpu.memory_space<vmem>>, %arg9: memref<1x128xf32, #tpu.memory_space<vmem>>, %arg10: memref<128x128xbf16, #tpu.memory_space<vmem>>, %arg11: memref<1x128xf32, #tpu.memory_space<vmem>>, %arg12: memref<1x1x128xf32, #tpu.memory_space<vmem>>) attributes {dimension_semantics = [#tpu.dimension_semantics<parallel>], iteration_bounds = array<i64: 2>, scalar_prefetch = 0 : i64, scratch_operands = 0 : i64, tpu.core_type = #tpu.core_type<tc>, window_params = [{transform_indices = @transform_0, window_bounds = array<i64: 1, 4, 7, 32>}, {pipeline_mode = #tpu.pipeline_mode<synchronous>, transform_indices = @transform_1, window_bounds = array<i64: 160, 256>}, {pipeline_mode = #tpu.pipeline_mode<synchronous>, transform_indices = @transform_2, window_bounds = array<i64: 1, 128>}, {pipeline_mode = #tpu.pipeline_mode<synchronous>, transform_indices = @transform_3, window_bounds = array<i64: 640, 256>}, {pipeline_mode = #tpu.pipeline_mode<synchronous>, transform_indices = @transform_4, window_bounds = array<i64: 1, 128>}, {pipeline_mode = #tpu.pipeline_mode<synchronous>, transform_indices = @transform_5, window_bounds = array<i64: 512, 128>}, {pipeline_mode = #tpu.pipeline_mode<synchronous>, transform_indices = @transform_6, window_bounds = array<i64: 1, 128>}, {pipeline_mode = #tpu.pipeline_mode<synchronous>, transform_indices = @transform_7, window_bounds = array<i64: 128, 128>}, {pipeline_mode = #tpu.pipeline_mode<synchronous>, transform_indices = @transform_8, window_bounds = array<i64: 1, 128>}, {pipeline_mode = #tpu.pipeline_mode<synchronous>, transform_indices = @transform_9, window_bounds = array<i64: 128, 128>}, {pipeline_mode = #tpu.pipeline_mode<synchronous>, transform_indices = @transform_10, window_bounds = array<i64: 1, 128>}, {transform_indices = @transform_11, window_bounds = array<i64: 1, 1, 128>}]} {
    %c0 = arith.constant 0 : index
    %c0_0 = arith.constant 0 : index
    %c0_1 = arith.constant 0 : index
    %c0_2 = arith.constant 0 : index
    %0 = vector.load %arg1[%c0, %c0_0, %c0_1, %c0_2] : memref<1x4x7x32xf32, #tpu.memory_space<vmem>>, vector<1x4x7x32xf32>
    %1 = vector.shape_cast %0 : vector<1x4x7x32xf32> to vector<4x7x32xf32>
    %2 = vector.extract_strided_slice %1 {offsets = [0, 0, 0], sizes = [1, 6, 32], strides = [1, 1, 1]} : vector<4x7x32xf32> to vector<1x6x32xf32>
    %3 = vector.shape_cast %2 : vector<1x6x32xf32> to vector<6x32xf32>
    %4 = vector.extract_strided_slice %1 {offsets = [1, 0, 0], sizes = [1, 6, 32], strides = [1, 1, 1]} : vector<4x7x32xf32> to vector<1x6x32xf32>
    %5 = vector.shape_cast %4 : vector<1x6x32xf32> to vector<6x32xf32>
    %6 = vector.extract_strided_slice %1 {offsets = [2, 0, 0], sizes = [1, 6, 32], strides = [1, 1, 1]} : vector<4x7x32xf32> to vector<1x6x32xf32>
    %7 = vector.shape_cast %6 : vector<1x6x32xf32> to vector<6x32xf32>
    %8 = vector.extract_strided_slice %1 {offsets = [3, 0, 0], sizes = [1, 6, 32], strides = [1, 1, 1]} : vector<4x7x32xf32> to vector<1x6x32xf32>
    %9 = vector.shape_cast %8 : vector<1x6x32xf32> to vector<6x32xf32>
    %10 = vector.extract_strided_slice %1 {offsets = [0, 1, 0], sizes = [1, 6, 32], strides = [1, 1, 1]} : vector<4x7x32xf32> to vector<1x6x32xf32>
    %11 = vector.shape_cast %10 : vector<1x6x32xf32> to vector<6x32xf32>
    %12 = tpu.concatenate %3, %5, %7, %9, %11 in 1 : vector<6x32xf32>, vector<6x32xf32>, vector<6x32xf32>, vector<6x32xf32>, vector<6x32xf32> -> vector<6x160xf32>
    %13 = vector.extract_strided_slice %1 {offsets = [1, 0, 0], sizes = [1, 6, 32], strides = [1, 1, 1]} : vector<4x7x32xf32> to vector<1x6x32xf32>
    %14 = vector.shape_cast %13 : vector<1x6x32xf32> to vector<6x32xf32>
    %15 = vector.extract_strided_slice %1 {offsets = [2, 0, 0], sizes = [1, 6, 32], strides = [1, 1, 1]} : vector<4x7x32xf32> to vector<1x6x32xf32>
    %16 = vector.shape_cast %15 : vector<1x6x32xf32> to vector<6x32xf32>
    %17 = vector.extract_strided_slice %1 {offsets = [3, 0, 0], sizes = [1, 6, 32], strides = [1, 1, 1]} : vector<4x7x32xf32> to vector<1x6x32xf32>
    %18 = vector.shape_cast %17 : vector<1x6x32xf32> to vector<6x32xf32>
    %19 = vector.extract_strided_slice %1 {offsets = [0, 1, 0], sizes = [1, 6, 32], strides = [1, 1, 1]} : vector<4x7x32xf32> to vector<1x6x32xf32>
    %20 = vector.shape_cast %19 : vector<1x6x32xf32> to vector<6x32xf32>
    %21 = vector.extract_strided_slice %1 {offsets = [1, 1, 0], sizes = [1, 6, 32], strides = [1, 1, 1]} : vector<4x7x32xf32> to vector<1x6x32xf32>
    %22 = vector.shape_cast %21 : vector<1x6x32xf32> to vector<6x32xf32>
    %23 = tpu.concatenate %14, %16, %18, %20, %22 in 1 : vector<6x32xf32>, vector<6x32xf32>, vector<6x32xf32>, vector<6x32xf32>, vector<6x32xf32> -> vector<6x160xf32>
    %24 = vector.extract_strided_slice %1 {offsets = [2, 0, 0], sizes = [1, 6, 32], strides = [1, 1, 1]} : vector<4x7x32xf32> to vector<1x6x32xf32>
    %25 = vector.shape_cast %24 : vector<1x6x32xf32> to vector<6x32xf32>
    %26 = vector.extract_strided_slice %1 {offsets = [3, 0, 0], sizes = [1, 6, 32], strides = [1, 1, 1]} : vector<4x7x32xf32> to vector<1x6x32xf32>
    %27 = vector.shape_cast %26 : vector<1x6x32xf32> to vector<6x32xf32>
    %28 = vector.extract_strided_slice %1 {offsets = [0, 1, 0], sizes = [1, 6, 32], strides = [1, 1, 1]} : vector<4x7x32xf32> to vector<1x6x32xf32>
    %29 = vector.shape_cast %28 : vector<1x6x32xf32> to vector<6x32xf32>
    %30 = vector.extract_strided_slice %1 {offsets = [1, 1, 0], sizes = [1, 6, 32], strides = [1, 1, 1]} : vector<4x7x32xf32> to vector<1x6x32xf32>
    %31 = vector.shape_cast %30 : vector<1x6x32xf32> to vector<6x32xf32>
    %32 = vector.extract_strided_slice %1 {offsets = [2, 1, 0], sizes = [1, 6, 32], strides = [1, 1, 1]} : vector<4x7x32xf32> to vector<1x6x32xf32>
    %33 = vector.shape_cast %32 : vector<1x6x32xf32> to vector<6x32xf32>
    %34 = tpu.concatenate %25, %27, %29, %31, %33 in 1 : vector<6x32xf32>, vector<6x32xf32>, vector<6x32xf32>, vector<6x32xf32>, vector<6x32xf32> -> vector<6x160xf32>
    %35 = vector.extract_strided_slice %1 {offsets = [3, 0, 0], sizes = [1, 6, 32], strides = [1, 1, 1]} : vector<4x7x32xf32> to vector<1x6x32xf32>
    %36 = vector.shape_cast %35 : vector<1x6x32xf32> to vector<6x32xf32>
    %37 = vector.extract_strided_slice %1 {offsets = [0, 1, 0], sizes = [1, 6, 32], strides = [1, 1, 1]} : vector<4x7x32xf32> to vector<1x6x32xf32>
    %38 = vector.shape_cast %37 : vector<1x6x32xf32> to vector<6x32xf32>
    %39 = vector.extract_strided_slice %1 {offsets = [1, 1, 0], sizes = [1, 6, 32], strides = [1, 1, 1]} : vector<4x7x32xf32> to vector<1x6x32xf32>
    %40 = vector.shape_cast %39 : vector<1x6x32xf32> to vector<6x32xf32>
    %41 = vector.extract_strided_slice %1 {offsets = [2, 1, 0], sizes = [1, 6, 32], strides = [1, 1, 1]} : vector<4x7x32xf32> to vector<1x6x32xf32>
    %42 = vector.shape_cast %41 : vector<1x6x32xf32> to vector<6x32xf32>
    %43 = vector.extract_strided_slice %1 {offsets = [3, 1, 0], sizes = [1, 6, 32], strides = [1, 1, 1]} : vector<4x7x32xf32> to vector<1x6x32xf32>
    %44 = vector.shape_cast %43 : vector<1x6x32xf32> to vector<6x32xf32>
    %45 = tpu.concatenate %36, %38, %40, %42, %44 in 1 : vector<6x32xf32>, vector<6x32xf32>, vector<6x32xf32>, vector<6x32xf32>, vector<6x32xf32> -> vector<6x160xf32>
    %46 = tpu.concatenate %12, %23, %34, %45 in 0 : vector<6x160xf32>, vector<6x160xf32>, vector<6x160xf32>, vector<6x160xf32> -> vector<24x160xf32>
    %47 = arith.truncf %46 : vector<24x160xf32> to vector<24x160xbf16>
    %c0_3 = arith.constant 0 : index
    %c0_4 = arith.constant 0 : index
    %48 = vector.load %arg2[%c0_3, %c0_4] : memref<160x256xbf16, #tpu.memory_space<vmem>>, vector<160x256xbf16>
    %cst = arith.constant dense<0.000000e+00> : vector<24x256xf32>
    %49 = tpu.matmul %47, %48, %cst {dimension_numbers = #tpu.dot_dimension_numbers<[1], [0], [0], [1], [0, 0, 1, 1], [], []>} : vector<24x160xbf16>, vector<160x256xbf16>, vector<24x256xf32> -> vector<24x256xf32>
    %c0_5 = arith.constant 0 : index
    %c0_6 = arith.constant 0 : index
    %50 = vector.load %arg3[%c0_5, %c0_6] : memref<1x128xf32, #tpu.memory_space<vmem>>, vector<1x128xf32>
    %51 = vector.extract_strided_slice %49 {offsets = [0, 0], sizes = [6, 256], strides = [1, 1]} : vector<24x256xf32> to vector<6x256xf32>
    %52 = vector.extract_strided_slice %49 {offsets = [6, 0], sizes = [6, 256], strides = [1, 1]} : vector<24x256xf32> to vector<6x256xf32>
    %53 = arith.maximumf %51, %52 : vector<6x256xf32>
    %54 = vector.extract_strided_slice %49 {offsets = [12, 0], sizes = [6, 256], strides = [1, 1]} : vector<24x256xf32> to vector<6x256xf32>
    %55 = vector.extract_strided_slice %49 {offsets = [18, 0], sizes = [6, 256], strides = [1, 1]} : vector<24x256xf32> to vector<6x256xf32>
    %56 = arith.maximumf %54, %55 : vector<6x256xf32>
    %57 = vector.extract_strided_slice %53 {offsets = [0, 0], sizes = [6, 128], strides = [1, 1]} : vector<6x256xf32> to vector<6x128xf32>
    %58 = vector.extract_strided_slice %53 {offsets = [0, 128], sizes = [6, 128], strides = [1, 1]} : vector<6x256xf32> to vector<6x128xf32>
    %59 = arith.maximumf %57, %58 : vector<6x128xf32>
    %60 = vector.broadcast %50 : vector<1x128xf32> to vector<6x128xf32>
    %61 = arith.addf %59, %60 : vector<6x128xf32>
    %cst_7 = arith.constant 0.000000e+00 : f32
    %62 = vector.broadcast %cst_7 : f32 to vector<6x128xf32>
    %63 = arith.maximumf %61, %62 : vector<6x128xf32>
    %64 = vector.extract_strided_slice %56 {offsets = [0, 0], sizes = [6, 128], strides = [1, 1]} : vector<6x256xf32> to vector<6x128xf32>
    %65 = vector.extract_strided_slice %56 {offsets = [0, 128], sizes = [6, 128], strides = [1, 1]} : vector<6x256xf32> to vector<6x128xf32>
    %66 = arith.maximumf %64, %65 : vector<6x128xf32>
    %67 = vector.broadcast %50 : vector<1x128xf32> to vector<6x128xf32>
    %68 = arith.addf %66, %67 : vector<6x128xf32>
    %cst_8 = arith.constant 0.000000e+00 : f32
    %69 = vector.broadcast %cst_8 : f32 to vector<6x128xf32>
    %70 = arith.maximumf %68, %69 : vector<6x128xf32>
    %71 = vector.extract_strided_slice %63 {offsets = [0, 0], sizes = [4, 128], strides = [1, 1]} : vector<6x128xf32> to vector<4x128xf32>
    %72 = vector.extract_strided_slice %70 {offsets = [0, 0], sizes = [4, 128], strides = [1, 1]} : vector<6x128xf32> to vector<4x128xf32>
    %73 = vector.extract_strided_slice %63 {offsets = [1, 0], sizes = [4, 128], strides = [1, 1]} : vector<6x128xf32> to vector<4x128xf32>
    %74 = vector.extract_strided_slice %70 {offsets = [1, 0], sizes = [4, 128], strides = [1, 1]} : vector<6x128xf32> to vector<4x128xf32>
    %75 = vector.extract_strided_slice %63 {offsets = [2, 0], sizes = [4, 128], strides = [1, 1]} : vector<6x128xf32> to vector<4x128xf32>
    %76 = tpu.concatenate %71, %72, %73, %74, %75 in 1 : vector<4x128xf32>, vector<4x128xf32>, vector<4x128xf32>, vector<4x128xf32>, vector<4x128xf32> -> vector<4x640xf32>
    %77 = vector.extract_strided_slice %70 {offsets = [0, 0], sizes = [4, 128], strides = [1, 1]} : vector<6x128xf32> to vector<4x128xf32>
    %78 = vector.extract_strided_slice %63 {offsets = [1, 0], sizes = [4, 128], strides = [1, 1]} : vector<6x128xf32> to vector<4x128xf32>
    %79 = vector.extract_strided_slice %70 {offsets = [1, 0], sizes = [4, 128], strides = [1, 1]} : vector<6x128xf32> to vector<4x128xf32>
    %80 = vector.extract_strided_slice %63 {offsets = [2, 0], sizes = [4, 128], strides = [1, 1]} : vector<6x128xf32> to vector<4x128xf32>
    %81 = vector.extract_strided_slice %70 {offsets = [2, 0], sizes = [4, 128], strides = [1, 1]} : vector<6x128xf32> to vector<4x128xf32>
    %82 = tpu.concatenate %77, %78, %79, %80, %81 in 1 : vector<4x128xf32>, vector<4x128xf32>, vector<4x128xf32>, vector<4x128xf32>, vector<4x128xf32> -> vector<4x640xf32>
    %83 = tpu.concatenate %76, %82 in 0 : vector<4x640xf32>, vector<4x640xf32> -> vector<8x640xf32>
    %84 = arith.truncf %83 : vector<8x640xf32> to vector<8x640xbf16>
    %c0_9 = arith.constant 0 : index
    %c0_10 = arith.constant 0 : index
    %85 = vector.load %arg4[%c0_9, %c0_10] : memref<640x256xbf16, #tpu.memory_space<vmem>>, vector<640x256xbf16>
    %cst_11 = arith.constant dense<0.000000e+00> : vector<8x256xf32>
    %86 = tpu.matmul %84, %85, %cst_11 {dimension_numbers = #tpu.dot_dimension_numbers<[1], [0], [0], [1], [0, 0, 1, 1], [], []>} : vector<8x640xbf16>, vector<640x256xbf16>, vector<8x256xf32> -> vector<8x256xf32>
    %87 = vector.extract_strided_slice %86 {offsets = [0, 0], sizes = [4, 256], strides = [1, 1]} : vector<8x256xf32> to vector<4x256xf32>
    %88 = vector.extract_strided_slice %86 {offsets = [4, 0], sizes = [4, 256], strides = [1, 1]} : vector<8x256xf32> to vector<4x256xf32>
    %89 = arith.maximumf %87, %88 : vector<4x256xf32>
    %90 = vector.extract_strided_slice %89 {offsets = [0, 0], sizes = [4, 128], strides = [1, 1]} : vector<4x256xf32> to vector<4x128xf32>
    %91 = vector.extract_strided_slice %89 {offsets = [0, 128], sizes = [4, 128], strides = [1, 1]} : vector<4x256xf32> to vector<4x128xf32>
    %92 = arith.maximumf %90, %91 : vector<4x128xf32>
    %c0_12 = arith.constant 0 : index
    %c0_13 = arith.constant 0 : index
    %93 = vector.load %arg5[%c0_12, %c0_13] : memref<1x128xf32, #tpu.memory_space<vmem>>, vector<1x128xf32>
    %94 = vector.broadcast %93 : vector<1x128xf32> to vector<4x128xf32>
    %95 = arith.addf %92, %94 : vector<4x128xf32>
    %cst_14 = arith.constant 0.000000e+00 : f32
    %96 = vector.broadcast %cst_14 : f32 to vector<4x128xf32>
    %97 = arith.maximumf %95, %96 : vector<4x128xf32>
    %98 = vector.extract_strided_slice %97 {offsets = [0, 0], sizes = [1, 128], strides = [1, 1]} : vector<4x128xf32> to vector<1x128xf32>
    %99 = vector.extract_strided_slice %97 {offsets = [1, 0], sizes = [1, 128], strides = [1, 1]} : vector<4x128xf32> to vector<1x128xf32>
    %100 = vector.extract_strided_slice %97 {offsets = [2, 0], sizes = [1, 128], strides = [1, 1]} : vector<4x128xf32> to vector<1x128xf32>
    %101 = vector.extract_strided_slice %97 {offsets = [3, 0], sizes = [1, 128], strides = [1, 1]} : vector<4x128xf32> to vector<1x128xf32>
    %102 = tpu.concatenate %98, %99, %100, %101 in 1 : vector<1x128xf32>, vector<1x128xf32>, vector<1x128xf32>, vector<1x128xf32> -> vector<1x512xf32>
    %103 = arith.truncf %102 : vector<1x512xf32> to vector<1x512xbf16>
    %c0_15 = arith.constant 0 : index
    %c0_16 = arith.constant 0 : index
    %104 = vector.load %arg6[%c0_15, %c0_16] : memref<512x128xbf16, #tpu.memory_space<vmem>>, vector<512x128xbf16>
    %cst_17 = arith.constant dense<0.000000e+00> : vector<1x128xf32>
    %105 = tpu.matmul %103, %104, %cst_17 {dimension_numbers = #tpu.dot_dimension_numbers<[1], [0], [0], [1], [0, 0, 1, 1], [], []>} : vector<1x512xbf16>, vector<512x128xbf16>, vector<1x128xf32> -> vector<1x128xf32>
    %c0_18 = arith.constant 0 : index
    %c0_19 = arith.constant 0 : index
    %106 = vector.load %arg7[%c0_18, %c0_19] : memref<1x128xf32, #tpu.memory_space<vmem>>, vector<1x128xf32>
    %107 = arith.addf %105, %106 : vector<1x128xf32>
    %cst_20 = arith.constant 0.000000e+00 : f32
    %108 = vector.broadcast %cst_20 : f32 to vector<1x128xf32>
    %109 = arith.maximumf %107, %108 : vector<1x128xf32>
    %110 = arith.truncf %109 : vector<1x128xf32> to vector<1x128xbf16>
    %c0_21 = arith.constant 0 : index
    %c0_22 = arith.constant 0 : index
    %111 = vector.load %arg8[%c0_21, %c0_22] : memref<128x128xbf16, #tpu.memory_space<vmem>>, vector<128x128xbf16>
    %cst_23 = arith.constant dense<0.000000e+00> : vector<1x128xf32>
    %112 = tpu.matmul %110, %111, %cst_23 {dimension_numbers = #tpu.dot_dimension_numbers<[1], [0], [0], [1], [0, 0, 1, 1], [], []>} : vector<1x128xbf16>, vector<128x128xbf16>, vector<1x128xf32> -> vector<1x128xf32>
    %c0_24 = arith.constant 0 : index
    %c0_25 = arith.constant 0 : index
    %113 = vector.load %arg9[%c0_24, %c0_25] : memref<1x128xf32, #tpu.memory_space<vmem>>, vector<1x128xf32>
    %114 = arith.addf %112, %113 : vector<1x128xf32>
    %cst_26 = arith.constant 0.000000e+00 : f32
    %115 = vector.broadcast %cst_26 : f32 to vector<1x128xf32>
    %116 = arith.maximumf %114, %115 : vector<1x128xf32>
    %117 = arith.truncf %116 : vector<1x128xf32> to vector<1x128xbf16>
    %c0_27 = arith.constant 0 : index
    %c0_28 = arith.constant 0 : index
    %118 = vector.load %arg10[%c0_27, %c0_28] : memref<128x128xbf16, #tpu.memory_space<vmem>>, vector<128x128xbf16>
    %cst_29 = arith.constant dense<0.000000e+00> : vector<1x128xf32>
    %119 = tpu.matmul %117, %118, %cst_29 {dimension_numbers = #tpu.dot_dimension_numbers<[1], [0], [0], [1], [0, 0, 1, 1], [], []>} : vector<1x128xbf16>, vector<128x128xbf16>, vector<1x128xf32> -> vector<1x128xf32>
    %c0_30 = arith.constant 0 : index
    %c0_31 = arith.constant 0 : index
    %120 = vector.load %arg11[%c0_30, %c0_31] : memref<1x128xf32, #tpu.memory_space<vmem>>, vector<1x128xf32>
    %121 = arith.addf %119, %120 : vector<1x128xf32>
    %122 = vector.shape_cast %121 : vector<1x128xf32> to vector<1x1x128xf32>
    %c0_32 = arith.constant 0 : index
    %c0_33 = arith.constant 0 : index
    %c0_34 = arith.constant 0 : index
    %123 = vector.load %arg12[%c0_32, %c0_33, %c0_34] : memref<1x1x128xf32, #tpu.memory_space<vmem>>, vector<1x1x128xf32>
    tpu.vector_store %arg12[%c0_32, %c0_33, %c0_34], %122 {strides = array<i32>} : memref<1x1x128xf32, #tpu.memory_space<vmem>>, vector<1x1x128xf32>,
    return
  }
  func.func @transform_0(%arg0: i32) -> (i32, i32, i32, i32) {
    %c0_i32 = arith.constant 0 : i32
    %c0_i32_0 = arith.constant 0 : i32
    %c0_i32_1 = arith.constant 0 : i32
    %c0_i32_2 = arith.constant 0 : i32
    return %arg0, %c0_i32, %c0_i32_0, %c0_i32_1 : i32, i32, i32, i32
  }
  func.func @transform_1(%arg0: i32) -> (i32, i32) {
    %c0_i32 = arith.constant 0 : i32
    %c0_i32_0 = arith.constant 0 : i32
    %c0_i32_1 = arith.constant 0 : i32
    return %c0_i32, %c0_i32_0 : i32, i32
  }
  func.func @transform_2(%arg0: i32) -> (i32, i32) {
    %c0_i32 = arith.constant 0 : i32
    %c0_i32_0 = arith.constant 0 : i32
    %c0_i32_1 = arith.constant 0 : i32
    return %c0_i32, %c0_i32_0 : i32, i32
  }
  func.func @transform_3(%arg0: i32) -> (i32, i32) {
    %c0_i32 = arith.constant 0 : i32
    %c0_i32_0 = arith.constant 0 : i32
    %c0_i32_1 = arith.constant 0 : i32
    return %c0_i32, %c0_i32_0 : i32, i32
  }
  func.func @transform_4(%arg0: i32) -> (i32, i32) {
    %c0_i32 = arith.constant 0 : i32
    %c0_i32_0 = arith.constant 0 : i32
    %c0_i32_1 = arith.constant 0 : i32
    return %c0_i32, %c0_i32_0 : i32, i32
  }
  func.func @transform_5(%arg0: i32) -> (i32, i32) {
    %c0_i32 = arith.constant 0 : i32
    %c0_i32_0 = arith.constant 0 : i32
    %c0_i32_1 = arith.constant 0 : i32
    return %c0_i32, %c0_i32_0 : i32, i32
  }
  func.func @transform_6(%arg0: i32) -> (i32, i32) {
    %c0_i32 = arith.constant 0 : i32
    %c0_i32_0 = arith.constant 0 : i32
    %c0_i32_1 = arith.constant 0 : i32
    return %c0_i32, %c0_i32_0 : i32, i32
  }
  func.func @transform_7(%arg0: i32) -> (i32, i32) {
    %c0_i32 = arith.constant 0 : i32
    %c0_i32_0 = arith.constant 0 : i32
    %c0_i32_1 = arith.constant 0 : i32
    return %c0_i32, %c0_i32_0 : i32, i32
  }
  func.func @transform_8(%arg0: i32) -> (i32, i32) {
    %c0_i32 = arith.constant 0 : i32
    %c0_i32_0 = arith.constant 0 : i32
    %c0_i32_1 = arith.constant 0 : i32
    return %c0_i32, %c0_i32_0 : i32, i32
  }
  func.func @transform_9(%arg0: i32) -> (i32, i32) {
    %c0_i32 = arith.constant 0 : i32
    %c0_i32_0 = arith.constant 0 : i32
    %c0_i32_1 = arith.constant 0 : i32
    return %c0_i32, %c0_i32_0 : i32, i32
  }
  func.func @transform_10(%arg0: i32) -> (i32, i32) {
    %c0_i32 = arith.constant 0 : i32
    %c0_i32_0 = arith.constant 0 : i32
    %c0_i32_1 = arith.constant 0 : i32
    return %c0_i32, %c0_i32_0 : i32, i32
  }
  func.func @transform_11(%arg0: i32) -> (i32, i32, i32) {
    %c0_i32 = arith.constant 0 : i32
    %c0_i32_0 = arith.constant 0 : i32
    %c0_i32_1 = arith.constant 0 : i32
    return %arg0, %c0_i32, %c0_i32_0 : i32, i32, i32
  }
}

</mosaic_0001>

<bundles_post_ra>
// kernel: lenet5_forward.1
= control target key start
LH: loop header
LB: loop body
LE: loop exit
PB: predicated region body
PF: predicated region fallthrough
CT: control target
= control target key end

     0   :  { %s3353_s0 = inlined_call_operand.vmem [shape: f32[2,4,7,32], index: 0, kind: input, shape index: {}]   ;;  %s3354_s1 = inlined_call_operand.hbm [shape: bf16[160,256], index: 1, kind: input, shape index: {}]   ;;  %s3355_s2 = inlined_call_operand.vmem [shape: f32[1,128], index: 2, kind: input, shape index: {}]   ;;  %s3356_s3 = inlined_call_operand.hbm [shape: bf16[640,256], index: 3, kind: input, shape index: {}]   ;;  %s3357_s4 = inlined_call_operand.vmem [shape: f32[1,128], index: 4, kind: input, shape index: {}]   ;;  %s3358_s5 = inlined_call_operand.vmem [shape: bf16[512,128], index: 5, kind: input, shape index: {}]   ;;  %s3359_s6 = inlined_call_operand.vmem [shape: f32[1,128], index: 6, kind: input, shape index: {}]   ;;  %s3360_s7 = inlined_call_operand.hbm [shape: bf16[128,128], index: 7, kind: input, shape index: {}]   ;;  %s3361_s8 = inlined_call_operand.vmem [shape: f32[1,128], index: 8, kind: input, shape index: {}]   ;;  %s3362_s9 = inlined_call_operand.hbm [shape: bf16[128,128], index: 9, kind: input, shape index: {}]   ;;  %s3363_s10 = inlined_call_operand.vmem [shape: f32[1,128], index: 10, kind: input, shape index: {}]   ;;  %s3364_s11 = inlined_call_operand.hbm [shape: f32[2,1,128], index: 11, kind: output, shape index: {}]  }
   0x1   :  { %3375 = sst [smem:[#allocation21_spill]] %s3364_s11 }
   0x2   :  { %16 = vsyncpa [#allocation3], 0 }
   0x3   :  { %17 = vsyncpa [#allocation6], 0 }
   0x4   :  { %18 = vsyncpa [#allocation9], 0 }
   0x5   :  { %19 = vsyncpa [#allocation4], 0 }
   0x6   :  { %21 = vsyncpa [#allocation4 + $0x1], 0  ;;  %s2930_s17 = smov 0   ;;  %s2932_s18 = smov 0  }
   0x7   :  { %s2934_s19 = smov 0   ;;  %s2936_s20 = smov 0  }
   0x8 LB: > { %3376 = sst [smem:[#allocation15_spill]] %s2841_s17  ;;  %s2951_s21 = sadd.s32 4294967295, %s2853_s20   ;;  %s2853_s20 = sphi %s2936_s20, %s3400_s20   ;;  %s2849_s19 = sphi %s2934_s19, %s3402_s19   ;;  %s2845_s18 = sphi %s2932_s18, %s3404_s18   ;;  %s2841_s17 = sphi %s2930_s17, %s3403_s17  }
   0x9   : > { %3377 = sst [smem:[#allocation16_spill]] %s2849_s19  ;;  %s2083_s22 = sadd.s32 4294967294, %s2853_s20  }
   0xa   : > { %3378 = sst [smem:[#allocation17_spill]] %s2853_s20  ;;  %s2955_s23 = sadd.s32 1, %s2853_s20  }
   0xb   : > { %3379 = sst [smem:[#allocation18_spill]] %s2955_s23  ;;  %s270_s24 = sadd.s32 1, %s2849_s19 }
   0xc   : > { %s267_s25 = ssub.s32 %s2853_s20, %s2955_s23  ;;  %p280_p0 = scmp.ne.s32.totalorder %s2849_s19, %s2845_s18 }
   0xd   : > { %p268_p1 = scmp.eq.s32.totalorder %s267_s25, 0  ;;  %p281_p2 = scmp.eq.s32.totalorder %s2951_s21, 1 }
   0xe   : > { %p286_p3 = scmp.ne.s32.totalorder %s2845_s18, %s2841_s17  ;;  %p287_p4 = scmp.eq.s32.totalorder %s2083_s22, 1 }
   0xf   : > { %s2966_s26 = scalar_select %p268_p1, %s2849_s19, %s270_s24  }
  0x10   : > { %p2968_p5 = por %p281_p2, %p280_p0  ;;  %p2972_p6 = por %p287_p4, %p286_p3 }
  0x11   : > { %3380 = sst [smem:[#allocation19_spill]] %s2966_s26  ;;  %p2084_p7 = scmp.ge.s32.totalorder %s2853_s20, 1 }
  0x12   : > { %s3381_s27 = scalar_select %p2968_p5, 1, 0 }
  0x13   : > { %s3382_s28 = scalar_select %p2972_p6, 1, 0 }
  0x14   : > { %p294_p8 = scmp.lt.s32.totalorder %s2853_s20, 3  ;;  %p3368_p9 = scmp.eq.s32.totalorder %s2951_s21, 0 }
  0x15   : > { %3383 = sst [smem:[#allocation20_spill]] %s3382_s28  ;;  %s2855_s30 = smov [#allocation5]  }
  0x16   : > { %p2979_p10 = pnand %p2084_p7, %p294_p8  ;;  %s322_s12 = sshll.u32 %s2855_s30, 4  ;;  %s2985_s12 = int_to_ptr.vmem [resolvable:$true] %s322_s12 }
  0x17   : > { %s2856_s14 = smov [#allocation2]   ;;  %s2857_s16 = smov [#allocation7]  }
  0x18   : > { %s3384_s29 = scalar_select %p2979_p10, 1, 0 }
  0x19   : > { %p2382_p11 = pneg %p2979_p10  ;;  %s306_s15 = sshll.u32 %s2856_s14, 4  ;;  %s2993_s15 = int_to_ptr.vmem [resolvable:$true] %s306_s15 }
  0x1a   : > { %s2995_s22 = sshll.u32 %s2857_s16, 4  ;;  %s2667_s26 = scalar_lea.hbm %s3356_s3, 10240  ;;  %s345_s22 = int_to_ptr.vmem [resolvable:$true] %s2995_s22 }
  0x1b   : > { %p2989_p12 = pnand %p3368_p9, %p2382_p11  ;;  %p2668_p13 = scmp.ne.s32.totalorder %s3356_s3, %s2667_s26 }
  0x1c   : > { %p2674_p3 = scmp.lt.u32.totalorder %s2667_s26, %s3356_s3 }
  0x1d   : > { %p3005_p0 = pneg %p2989_p12 }
  0x1f   : > { %p2670_p1 = pnand %p3005_p0, %p2668_p13 }
  0x21   : > { %p2671_p2 = pneg %p2670_p1 }
  0x23   : > { %p2676_p4 = pnand %p2674_p3, %p2671_p2 }
  0x25   : > { %2679 = shalt.err (!%p2676_p4)
}
  0x26   : > { %s2680_s19 = scalar_lea.vmem %s2985_s12, 10240  ;;  %p2688_p9 = scmp.lt.s32.totalorder %s2985_s12, %s2985_s12 }
  0x27   : > { %p2681_p7 = scmp.ne.s32.totalorder %s2985_s12, %s2680_s19  ;;  %p2689_p6 = scmp.lt.s32.totalorder %s2680_s19, %s2680_s19 }
  0x29   : > { %p2683_p8 = pnand %p2681_p7, %p3005_p0  ;;  %p2690_p13 = por %p2689_p6, %p2688_p9 }
  0x2b   : > { %p2684_p11 = pneg %p2683_p8 }
  0x2d   : > { %p2691_p1 = pnand %p2690_p13, %p2684_p11 }
  0x2f   : > { %2694 = shalt.err (!%p2691_p1)
}
  0x30   : > { %s2858_s24 = smov 128   ;;  %s2859_s26 = smov 8  }
  0x31   : > { %2388 = dma.hbm_to_vmem [thread:$0]  (!%p2989_p12), %s3356_s3, 10240, %s2985_s12, [#allocation6], %s2858_s24, %s2858_s24, %s2859_s26  }
  0x32   : > { %s2695_s28 = scalar_lea.hbm %s3354_s1, 2560 }
  0x33   : > { %p2696_p6 = scmp.ne.s32.totalorder %s3354_s1, %s2695_s28  ;;  %p2702_p3 = scmp.lt.u32.totalorder %s2695_s28, %s3354_s1 }
  0x35   : > { %p2698_p9 = pnand %p2696_p6, %p3005_p0 }
  0x37   : > { %p2699_p2 = pneg %p2698_p9 }
  0x39   : > { %p2704_p4 = pnand %p2702_p3, %p2699_p2 }
  0x3b   : > { %2707 = shalt.err (!%p2704_p4)
}
  0x3c   : > { %s2708_s12 = scalar_lea.vmem %s2993_s15, 2560  ;;  %p2716_p13 = scmp.lt.s32.totalorder %s2993_s15, %s2993_s15 }
  0x3d   : > { %p2709_p7 = scmp.ne.s32.totalorder %s2993_s15, %s2708_s12  ;;  %p2717_p1 = scmp.lt.s32.totalorder %s2708_s12, %s2708_s12 }
  0x3f   : > { %p2711_p8 = pnand %p2709_p7, %p3005_p0  ;;  %p2718_p6 = por %p2717_p1, %p2716_p13 }
  0x41   : > { %p2712_p11 = pneg %p2711_p8 }
  0x43   : > { %p2719_p9 = pnand %p2718_p6, %p2712_p11 }
  0x45   : > { %2722 = shalt.err (!%p2719_p9)
}
  0x46   : > { %2385 = dma.hbm_to_vmem [thread:$0]  (!%p2989_p12), %s3354_s1, 2560, %s2993_s15, [#allocation3], %s2858_s24, %s2858_s24, %s2859_s26  }
  0x47   : > { %s2723_s25 = scalar_lea.hbm %s3360_s7, 1024 }
  0x48   : > { %p2724_p2 = scmp.ne.s32.totalorder %s3360_s7, %s2723_s25  ;;  %p2730_p7 = scmp.lt.u32.totalorder %s2723_s25, %s3360_s7 }
  0x4a   : > { %p2726_p3 = pnand %p2724_p2, %p3005_p0 }
  0x4c   : > { %p2727_p4 = pneg %p2726_p3 }
  0x4e   : > { %p2732_p8 = pnand %p2730_p7, %p2727_p4 }
  0x50   : > { %2735 = shalt.err (!%p2732_p8)
}
  0x51   : > { %s2736_s12 = scalar_lea.vmem %s345_s22, 1024  ;;  %p2744_p6 = scmp.lt.s32.totalorder %s345_s22, %s345_s22 }
  0x52   : > { %p2737_p11 = scmp.ne.s32.totalorder %s345_s22, %s2736_s12  ;;  %p2745_p9 = scmp.lt.s32.totalorder %s2736_s12, %s2736_s12 }
  0x54   : > { %p2739_p13 = pnand %p2737_p11, %p3005_p0  ;;  %p2746_p5 = por %p2745_p9, %p2744_p6 }
  0x56   : > { %p2740_p1 = pneg %p2739_p13 }
  0x58   : > { %p2747_p10 = pnand %p2746_p5, %p2740_p1 }
  0x5a   : > { %2750 = shalt.err (!%p2747_p10)
}
  0x5b   : > { %s2860_s15 = smov 64   ;;  %s2861_s24 = smov 4  }
  0x5c   : > { %2391 = dma.hbm_to_vmem [thread:$0]  (!%p2989_p12), %s3360_s7, 1024, %s345_s22, [#allocation6], %s2860_s15, %s2860_s15, %s2861_s24  }
  0x5d   : > { %s2862_s17 = smov [#allocation8]   ;;  %s2751_s30 = scalar_lea.hbm %s3362_s9, 1024 }
  0x5e   : > { %s360_s20 = sshll.u32 %s2862_s17, 4  ;;  %p2752_p5 = scmp.ne.s32.totalorder %s3362_s9, %s2751_s30  ;;  %s361_s20 = int_to_ptr.vmem [resolvable:$true] %s360_s20 }
  0x5f   : > { %p2758_p3 = scmp.lt.u32.totalorder %s2751_s30, %s3362_s9 }
  0x60   : > { %p2754_p10 = pnand %p2752_p5, %p3005_p0 }
  0x62   : > { %p2755_p2 = pneg %p2754_p10 }
  0x64   : > { %p2760_p4 = pnand %p2758_p3, %p2755_p2 }
  0x66   : > { %2763 = shalt.err (!%p2760_p4)
}
  0x67   : > { %s2764_s22 = scalar_lea.vmem %s361_s20, 1024  ;;  %p2772_p13 = scmp.lt.s32.totalorder %s361_s20, %s361_s20 }
  0x68   : > { %p2765_p7 = scmp.ne.s32.totalorder %s361_s20, %s2764_s22  ;;  %p2773_p1 = scmp.lt.s32.totalorder %s2764_s22, %s2764_s22 }
  0x6a   : > { %p2767_p8 = pnand %p2765_p7, %p3005_p0  ;;  %p2774_p6 = por %p2773_p1, %p2772_p13 }
  0x6c   : > { %p2768_p11 = pneg %p2767_p8 }
  0x6e   : > { %p2775_p9 = pnand %p2774_p6, %p2768_p11 }
  0x70   : > { %2778 = shalt.err (!%p2775_p9)
}
  0x71   : > { %2394 = dma.hbm_to_vmem [thread:$0]  (!%p2989_p12), %s3362_s9, 1024, %s361_s20, [#allocation9], %s2860_s15, %s2860_s15, %s2861_s24  }
  0x72   : > { %p3387_p5 = scmp.ne.s32.totalorder %s3384_s29, 0 }
  0x73   : > { %p3388_p10 = scmp.eq.s32.totalorder (!%p3387_p5), %s2951_s21, 0 }
  0x74   : > { %387 = sbr.rel (%p3387_p5) target bundleno = 1529 (0x5f9), region = 64 }
  0x7b   : > { %2824 = dma.done.wait (%p3388_p10), [#allocation3], 2560   ;;  %p3389_p0 = pmov %p3388_p10 }
  0x7d   : > { %2826 = vsyncadd (%p3389_p0), [#allocation3], 4294964736  ;;  %p3390_p2 = pmov %p3389_p0 }
  0x7e   : > { %p3391_p3 = pmov %p3389_p0 }
  0x7f   : > { %2828 = dma.done.wait (%p3390_p2), [#allocation6], 11264  }
  0x80   : > { %2830 = vsyncadd (%p3391_p3), [#allocation6], 4294956032  ;;  %p3392_p4 = pmov %p3389_p0 }
  0x81   : > { %p3393_p12 = pmov %p3389_p0 }
  0x82   : > { %2832 = dma.done.wait (%p3392_p4), [#allocation9], 1024  }
  0x83   : > { %2834 = vsyncadd (%p3393_p12), [#allocation9], 4294966272  ;;  %p438_p7 = scmp.lt.s32.totalorder %s2951_s21, 1  ;;  %s2863_s17 = smov 32   ;;  %v2469_v8 = vld [vmem:[#allocation2 + $0x4] ss:$8 sps:$4 sm:$0xff]  }
  0x84   : > { %v2471_v9 = vld [vmem:[#allocation2] ss:$8 sps:$4 sm:$0xff]   ;;  %v2472_v11 = vld [vmem:[#allocation2 + $0x14] ss:$8 sps:$4 sm:$0xff]   ;;  %vm523_vm0 = vcmask 1045504   ;;  %vm526_vm1 = vcmask 1043456   ;;  %662 = vmatprep.subr.bf16.mxu0 %v2469_v8 }
  0x85   : > { %s439_s23 = scalar_select %p438_p7, %s2951_s21, 1  ;;  %663 = vmatpush1.bf16.msra.mxu0 %v2471_v9  ;;  %v2474_v15 = vld [vmem:[#allocation2 + $0x10] ss:$8 sps:$4 sm:$0xff]   ;;  %v2475_v16 = vld [vmem:[#allocation2 + $0x24] ss:$8 sps:$4 sm:$0xff]   ;;  %vm463_vm2 = vcmask 261120  }
  0x86   : > { %s2864_s20 = smov 96   ;;  %664 = vmatprep.subr.bf16.mxu0 %v2472_v11  ;;  %s2865_s28 = smov 64   ;;  %v2477_v20 = vld [vmem:[#allocation2 + $0x20] ss:$8 sps:$4 sm:$0xff]   ;;  %v2478_v21 = vld [vmem:[#allocation2 + $0x34] ss:$8 sps:$4 sm:$0xff]  }
  0x87   : > { %s2253_s29 = sshll.u32 %s439_s23, 5  ;;  %v2480_v22 = vld [vmem:[#allocation2 + $0x30] ss:$8 sps:$4 sm:$0xff]   ;;  %v2481_v23 = vld [vmem:[#allocation2 + $0x44] ss:$8 sps:$4 sm:$0xff]   ;;  %vm465_vm3 = vcmask 523264  }
  0x88   : > { %s442_s24 = scalar_lea.vmem %s3353_s0, %s2253_s29  ;;  %v2499_v24 = vld [vmem:[#allocation5 + $0x4] ss:$8 sps:$4 sm:$0xff]   ;;  %v2501_v25 = vld [vmem:[#allocation5] ss:$8 sps:$4 sm:$0xff]   ;;  %v2502_v26 = vld [vmem:[#allocation5 + $0x14] ss:$8 sps:$4 sm:$0xff]  }
  0x89   : > { %v3105_v0 = vld [vmem:[%s442_s24 + $0x10] sm:$0x7f]  ;;  %v3107_v1 = vld [vmem:[%s442_s24 + $0x18] sm:$0x7f]  ;;  %v3109_v2 = vld [vmem:[%s442_s24 + $0x8] sm:$0x7f]  ;;  %665 = vmatpush1.bf16.msra.mxu0 %v2474_v15  ;;  %1270 = vmatprep.subr.bf16.mxu1 %v2499_v24 }
  0x8a   : > { %v2454_v3 = vpack.i.bf16 %v3107_v1, %v3105_v0  ;;  %449 = vrot.lane.b32.xlu1 %v3109_v2, %s2863_s17  ;;  %v478_v4 = vrot.slane %v3109_v2, 1  ;;  %v3116_v5 = vld [vmem:[%s442_s24] sm:$0x7f]  ;;  %v491_v6 = vrot.slane %v3105_v0, 1  ;;  %666 = vmatprep.subr.bf16.mxu0 %v2475_v16  ;;  %v2484_v28 = vld [vmem:[#allocation2 + $0x54] ss:$8 sps:$4 sm:$0xff]  }
  0x8b   : > { %v461_v7 = vrot.slane %v3116_v5, 1  ;;  %v2483_v27 = vld [vmem:[#allocation2 + $0x40] ss:$8 sps:$4 sm:$0xff]   ;;  %1271 = vmatpush1.bf16.msra.mxu1 %v2501_v25  ;;  %v2504_v29 = vld [vmem:[#allocation5 + $0x10] ss:$8 sps:$4 sm:$0xff]   ;;  %v2097_v63 = vrot.slane %v3107_v1, 7 }
  0x8c   : > { %2455 = vrot.lane.b32.xlu0 %v2454_v3, %s2863_s17  ;;  %v3121_v10 = vrot.slane %v491_v6, 4  ;;  %v510_v14 = vrot.slane %v478_v4, 2  ;;  %1272 = vmatprep.subr.bf16.mxu1 %v2502_v26  ;;  %v2505_v30 = vld [vmem:[#allocation5 + $0x24] ss:$8 sps:$4 sm:$0xff]   ;;  %v2486_v31 = vld [vmem:[#allocation2 + $0x50] ss:$8 sps:$4 sm:$0xff]  }
  0x8d   : > { %v2459_v12 = vpack.i.bf16 %v461_v7, %v3107_v1  ;;  %v2464_v13 = vpack.i.bf16 %v478_v4, %v461_v7  ;;  %667 = vmatpush1.bf16.msra.mxu0 %v2477_v20  ;;  %v2487_v32 = vld [vmem:[#allocation2 + $0x64] ss:$8 sps:$4 sm:$0xff]   ;;  %v2507_v33 = vld [vmem:[#allocation5 + $0x20] ss:$8 sps:$4 sm:$0xff]   ;;  %v2508_v34 = vld [vmem:[#allocation5 + $0x34] ss:$8 sps:$4 sm:$0xff]  }
  0x8e   : > { %v525_v17 = vsel %vm523_vm0, %v461_v7, %v510_v14  ;;  %v528_v18 = vsel %vm526_vm1, %v510_v14, %v3121_v10  ;;  %668 = vmatprep.subr.bf16.mxu0 %v2478_v21  ;;  %v2489_v35 = vld [vmem:[#allocation2 + $0x60] ss:$8 sps:$4 sm:$0xff]   ;;  %v2490_v36 = vld [vmem:[#allocation2 + $0x74] ss:$8 sps:$4 sm:$0xff]   ;;  %v2510_v37 = vld [vmem:[#allocation5 + $0x30] ss:$8 sps:$4 sm:$0xff]  }
  0x8f   : > { %2465 = vrot.lane.b32.xlu1 %v2464_v13, %s2864_s20  ;;  %v533_v19 = vpack.c.bf16 %v528_v18, %v525_v17  ;;  %1273 = vmatpush1.bf16.msra.mxu1 %v2504_v29  ;;  %v2492_v38 = vld [vmem:[#allocation2 + $0x70] ss:$8 sps:$4 sm:$0xff]   ;;  %v2511_v39 = vld [vmem:[#allocation5 + $0x44] ss:$8 sps:$4 sm:$0xff]   ;;  %v2513_v41 = vld [vmem:[#allocation5 + $0x40] ss:$8 sps:$4 sm:$0xff]  }
  0x90   : > { %2460 = vrot.lane.b32.xlu0 %v2459_v12, %s2865_s28  ;;  %1274 = vmatprep.subr.bf16.mxu1 %v2505_v30  ;;  %v2493_v40 = vld [vmem:[#allocation2 + $0x84] ss:$8 sps:$4 sm:$0xff]   ;;  %v2514_v42 = vld [vmem:[#allocation5 + $0x54] ss:$8 sps:$4 sm:$0xff]   ;;  %v2495_v43 = vld [vmem:[#allocation2 + $0x80] ss:$8 sps:$4 sm:$0xff]  }
  0x91   : > { %2118 = vmatprep.mubr.msk.bf16.mxu0 %vm463_vm2, %v533_v19  ;;  %669 = vmatpush1.bf16.msra.mxu0 %v2480_v22  ;;  %v2496_v44 = vld [vmem:[#allocation2 + $0x94] ss:$8 sps:$4 sm:$0xff]   ;;  %v2516_v45 = vld [vmem:[#allocation5 + $0x50] ss:$8 sps:$4 sm:$0xff]   ;;  %v2517_v46 = vld [vmem:[#allocation5 + $0x64] ss:$8 sps:$4 sm:$0xff]  }
  0x92   : > { %670 = vmatprep.subr.bf16.mxu0 %v2481_v23  ;;  %v2498_v47 = vld [vmem:[#allocation2 + $0x90] ss:$8 sps:$4 sm:$0xff]   ;;  %v2519_v48 = vld [vmem:[#allocation5 + $0x60] ss:$8 sps:$4 sm:$0xff]   ;;  %v2520_v49 = vld [vmem:[#allocation5 + $0x74] ss:$8 sps:$4 sm:$0xff]  }
  0x93   : > { %457 = vrot.lane.b32.xlu1 %v3107_v1, %s2864_s20  ;;  %1275 = vmatpush1.bf16.msra.mxu1 %v2507_v33  ;;  %v2522_v50 = vld [vmem:[#allocation5 + $0x70] ss:$8 sps:$4 sm:$0xff]   ;;  %v2523_v51 = vld [vmem:[#allocation5 + $0x84] ss:$8 sps:$4 sm:$0xff]   ;;  %v2525_v52 = vld [vmem:[#allocation5 + $0x80] ss:$8 sps:$4 sm:$0xff]  }
  0x94   : > { %453 = vrot.lane.b32.xlu0 %v3105_v0, %s2865_s28  ;;  %1276 = vmatprep.subr.bf16.mxu1 %v2508_v34  ;;  %v2526_v53 = vld [vmem:[#allocation5 + $0x94] ss:$8 sps:$4 sm:$0xff]   ;;  %v2528_v54 = vld [vmem:[#allocation5 + $0x90] ss:$8 sps:$4 sm:$0xff]   ;;  %vm467_vm4 = vcmask 785408   ;;  %vm529_vm5 = vcmask 1041408  }
  0x95   : > { %671 = vmatpush1.bf16.msra.mxu0 %v2483_v27  ;;  %v531_v16 = vsel %vm529_vm5, %v3121_v10, %v2097_v63  ;;  %v2529_v30 = vld [vmem:[#allocation5 + $0xa4] ss:$8 sps:$4 sm:$0xff]   ;;  %v2537_v34 = vld [vmem:[#allocation5 + $0xc0] ss:$8 sps:$4 sm:$0xff]   ;;  %vm760_vm6 = vcmask 1042432   ;;  %vm769_vm7 = vcmask 1046528  }
  0x96   : > { %672 = vmatprep.subr.bf16.mxu0 %v2484_v28  ;;  %v535_v21 = vpack.c.bf16 %v531_v16, %v531_v16  ;;  %v2535_v33 = vld [vmem:[#allocation5 + $0xc4] ss:$8 sps:$4 sm:$0xff]   ;;  %vm2868_vm8 = vmmov 0   ;;  %s436_s19 = sand.u32 1, %s2845_s18   ;;  %s2250_s26 = sshll.u32 %s2951_s21, 4 }
  0x97   : > { %498 = vrot.lane.b32.xlu1 %v478_v4, %s2865_s28  ;;  %1277 = vmatpush1.bf16.msra.mxu1 %v2510_v37  ;;  %v2541_v37 = vld [vmem:[#allocation5 + $0xe4] ss:$8 sps:$4 sm:$0xff]   ;;  %s437_s11 = scalar_lea.vmem [#allocation10], %s436_s19  ;;  %s3394_s15 = sld [smem:[#allocation21_spill]] }
  0x98   : > { %495 = vrot.lane.b32.xlu0 %v461_v7, %s2863_s17  ;;  %1278 = vmatprep.subr.bf16.mxu1 %v2511_v39  ;;  %v2544_v39 = vld [vmem:[#allocation5 + $0xf4] ss:$8 sps:$4 sm:$0xff]   ;;  %s1987_s23 = sshll.u32 %s437_s11, 4  ;;  %s1975_s17 = scalar_lea.sflag [#allocation4], %s436_s19  ;;  %s3313_s23 = int_to_ptr.vmem [resolvable:$true] %s1987_s23 }
  0x99   : > { %673 = vmatpush1.bf16.msra.mxu0 %v2486_v31  ;;  %v2531_v31 = vld [vmem:[#allocation5 + $0xa0] ss:$8 sps:$4 sm:$0xff]   ;;  %s2779_s21 = scalar_lea.vmem %s3313_s23, 16  ;;  %p3395_p11 = scmp.ne.s32.totalorder %s3381_s27, 0 }
  0x9a   : > { %674 = vmatprep.subr.bf16.mxu0 %v2487_v32  ;;  %v2532_v32 = vld [vmem:[#allocation5 + $0xb4] ss:$8 sps:$4 sm:$0xff]   ;;  %p2780_p8 = scmp.ne.s32.totalorder %s3313_s23, %s2779_s21 }
  0x9b   : > { %1279 = vmatpush1.bf16.msra.mxu1 %v2513_v41  ;;  %v2549_v41 = vld [vmem:[#allocation5 + $0x104] ss:$8 sps:$4 sm:$0xff]  }
  0x9c   : > { %501 = vrot.lane.b32.xlu0 %v491_v6, %s2864_s20  ;;  %1280 = vmatprep.subr.bf16.mxu1 %v2514_v42  ;;  %v2619_v42 = vld [vmem:[%s3358_s5 + $0x40] sm:$0xff]   ;;  %p2781_p13 = pnand %p2780_p8, %p3395_p11  ;;  %s2869_s20 = smov [#allocation10]  }
  0x9d   : > { %675 = vmatpush1.bf16.msra.mxu0 %v2489_v35  ;;  %v2538_v35 = vld [vmem:[#allocation5 + $0xd4] ss:$8 sps:$4 sm:$0xff]   ;;  %s3311_s24 = scalar_lea.hbm %s3394_s15, %s2250_s26  ;;  %s2783_s28 = sshll.u32 %s2869_s20, 4  ;;  %s2784_s28 = int_to_ptr.vmem [resolvable:$false] %s2783_s28 }
  0x9e   : > { %676 = vmatprep.subr.bf16.mxu0 %v2490_v36  ;;  %v2540_v36 = vld [vmem:[#allocation5 + $0xd0] ss:$8 sps:$4 sm:$0xff]   ;;  %p2782_p1 = pneg %p2781_p13  ;;  %s2785_s25 = scalar_lea.vmem %s2784_s28, 32 }
  0x9f   : > { %1281 = vmatpush1.bf16.msra.mxu1 %v2516_v45  ;;  %v2622_v45 = vld [vmem:[%s3358_s5 + $0x8] sm:$0xff]   ;;  %p2786_p6 = scmp.lt.s32.totalorder %s3313_s23, %s2784_s28  ;;  %p2787_p9 = scmp.lt.s32.totalorder %s2785_s25, %s2779_s21 }
  0xa0   : > { %1282 = vmatprep.subr.bf16.mxu1 %v2517_v46  ;;  %v2623_v46 = vld [vmem:[%s3358_s5 + $0x50] sm:$0xff]  }
  0xa1   : > { %677 = vmatpush1.bf16.msra.mxu0 %v2492_v38  ;;  %v2543_v38 = vld [vmem:[#allocation5 + $0xe0] ss:$8 sps:$4 sm:$0xff]   ;;  %p2788_p5 = por %p2787_p9, %p2786_p6 }
  0xa2   : > { %678 = vmatprep.subr.bf16.mxu0 %v2493_v40  ;;  %v2546_v40 = vld [vmem:[#allocation5 + $0xf0] ss:$8 sps:$4 sm:$0xff]  }
  0xa3   : > { %1283 = vmatpush1.bf16.msra.mxu1 %v2519_v48  ;;  %p2789_p10 = pnand %p2788_p5, %p2782_p1 }
  0xa4   : > { %1284 = vmatprep.subr.bf16.mxu1 %v2520_v49 }
  0xa5   : > { %679 = vmatpush1.bf16.msra.mxu0 %v2495_v43  ;;  %v2620_v43 = vld [vmem:[%s3358_s5] sm:$0xff]  }
  0xa6   : > { %680 = vmatprep.subr.bf16.mxu0 %v2496_v44  ;;  %v2621_v44 = vld [vmem:[%s3358_s5 + $0x48] sm:$0xff]  }
  0xa7   : > { %1285 = vmatpush1.bf16.msra.mxu1 %v2522_v50  ;;  %v2624_v50 = vld [vmem:[%s3358_s5 + $0x10] sm:$0xff]  }
  0xa8   : > { %1286 = vmatprep.subr.bf16.mxu1 %v2523_v51 }
  0xa9   : > { %681 = vmatpush1.bf16.msra.mxu0 %v2498_v47 }
  0xaa   : > { %2254 = vmatprep.subr.bf16.mxu0 %v2619_v42  ;;  %v2550_v42 = vld [vmem:[#allocation5 + $0x110] ss:$8 sps:$4 sm:$0xff]  }
  0xab   : > { %1287 = vmatpush1.bf16.msra.mxu1 %v2525_v52 }
  0xac   : > { %1288 = vmatprep.subr.bf16.mxu1 %v2526_v53 }
  0xaf   : > { %1289 = vmatpush1.bf16.msra.mxu1 %v2528_v54  ;;  %v2625_v54 = vld [vmem:[%s3358_s5 + $0x58] sm:$0xff]  }
  0xb0   : > { %1290 = vmatprep.subr.bf16.mxu1 %v2529_v30 }
  0xb3   : > { %1291 = vmatpush1.bf16.msra.mxu1 %v2531_v31 }
  0xb4   : > { %1292 = vmatprep.subr.bf16.mxu1 %v2532_v32 }
  0xfc   : > { %v450_v55 = vpop.permute.xlu1 %449 }
  0xfd   : > { %v464_v12 = vsel %vm463_vm2, %v3116_v5, %v450_v55 }
  0xfe   : > { %v2456_v56 = vpop.permute.xlu0 %2455 }
  0xff   : > { %v2458_v57 = vunpack.i.h.bf16 %v2456_v56  ;;  %v2457_v58 = vunpack.i.l.bf16 %v2456_v56 }
 0x101   : > { %v2466_v59 = vpop.permute.xlu1 %2465  ;;  %v492_v6 = vsel %vm463_vm2, %v3105_v0, %v2458_v57  ;;  %v479_v7 = vsel %vm463_vm2, %v3109_v2, %v2457_v58 }
 0x102   : > { %v2461_v60 = vpop.permute.xlu0 %2460  ;;  %v2468_v61 = vunpack.i.h.bf16 %v2466_v59  ;;  %v2467_v62 = vunpack.i.l.bf16 %v2466_v59 }
 0x103   : > { %v2463_v3 = vunpack.i.h.bf16 %v2461_v60  ;;  %v2462_v4 = vunpack.i.l.bf16 %v2461_v60  ;;  %v2626_v60 = vld [vmem:[%s3358_s5 + $0x18] sm:$0xff]  }
 0x105   : > { %v480_v8 = vsel %vm465_vm3, %v479_v7, %v2462_v4  ;;  %v493_v9 = vsel %vm465_vm3, %v492_v6, %v2463_v3  ;;  %v458_v11 = vpop.permute.xlu1 %457  ;;  %v2120_v3 = vld [vmem:[%s3355_s2] ss:$0 sm:$0xff] }
 0x106   : > { %v454_v13 = vpop.permute.xlu0 %453  ;;  %v481_v14 = vsel %vm467_vm4, %v480_v8, %v2467_v62  ;;  %v494_v15 = vsel %vm467_vm4, %v493_v9, %v2468_v61 }
 0x107   : > { %v466_v0 = vsel %vm465_vm3, %v464_v12, %v454_v13  ;;  %v509_v17 = vrot.slane %v481_v14, 2  ;;  %v514_v2 = vrot.slane %v494_v15, 4 }
 0x108   : > { %v468_v18 = vsel %vm467_vm4, %v466_v0, %v458_v11 }
 0x109   : > { %v524_v19 = vsel %vm523_vm0, %v468_v18, %v509_v17  ;;  %v527_v20 = vsel %vm526_vm1, %v509_v17, %v514_v2  ;;  %v499_v24 = vpop.permute.xlu1 %498 }
 0x10a   : > { %v496_v5 = vpop.permute.xlu0 %495  ;;  %v532_v22 = vpack.c.bf16 %v527_v20, %v524_v19 }
 0x10b   : > { %v505_v23 = vsel %vm463_vm2, %v3107_v1, %v496_v5  ;;  %v2534_v1 = vld [vmem:[#allocation5 + $0xb0] ss:$8 sps:$4 sm:$0xff]  }
 0x10c   : > { %695 = vmatmul.mubr.bf16.vlgmr.msra.gmra.mrb[0].mxu0 %v532_v22  ;;  %v506_v10 = vsel %vm465_vm3, %v505_v23, %v499_v24  ;;  %1293 = vmatpush1.bf16.msra.mxu1 %v2534_v1  ;;  %v2547_v1 = vld [vmem:[#allocation5 + $0x100] ss:$8 sps:$4 sm:$0xff]  }
 0x10d   : > { %2119 = vmatprep.mubr.msk.bf16.mxu0 %vm463_vm2, %v535_v21  ;;  %1294 = vmatprep.subr.bf16.mxu1 %v2535_v33 }
 0x10e   : > { %v502_v25 = vpop.permute.xlu0 %501  ;;  %2255 = vmatpush3.bf16.msra.mxu0 %v2620_v43  ;;  %v2555_v43 = vld [vmem:[#allocation5 + $0x124] ss:$8 sps:$4 sm:$0xff]  }
 0x10f   : > { %v507_v26 = vsel %vm467_vm4, %v506_v10, %v502_v25  ;;  %2256 = vmatprep.subr.bf16.mxu0 %v2621_v44  ;;  %v2553_v44 = vld [vmem:[#allocation5 + $0x120] ss:$8 sps:$4 sm:$0xff]  }
 0x110   : > { %v519_v27 = vrot.slane %v507_v26, 6  ;;  %1295 = vmatpush1.bf16.msra.mxu1 %v2537_v34 }
 0x111   : > { %1296 = vmatprep.subr.bf16.mxu1 %v2538_v35 }
 0x112   : > { %v530_v28 = vsel %vm529_vm5, %v514_v2, %v519_v27  ;;  %2257 = vmatpush3.bf16.msra.mxu0 %v2622_v45  ;;  %v2558_v45 = vld [vmem:[#allocation5 + $0x134] ss:$8 sps:$4 sm:$0xff]  }
 0x113   : > { %v534_v29 = vpack.c.bf16 %v530_v28, %v530_v28  ;;  %2258 = vmatprep.subr.bf16.mxu0 %v2623_v46  ;;  %v2556_v46 = vld [vmem:[#allocation5 + $0x130] ss:$8 sps:$4 sm:$0xff]  }
 0x114   : > { %1297 = vmatpush1.bf16.msra.mxu1 %v2540_v36 }
 0x115   : > { %705 = vmatmul.mubr.bf16.gmra.mrb[4].mxu0 %v534_v29  ;;  %1298 = vmatprep.subr.bf16.mxu1 %v2541_v37 }
 0x116   : > { %2259 = vmatpush3.bf16.msra.mxu0 %v2624_v50  ;;  %v2562_v50 = vld [vmem:[#allocation5 + $0x150] ss:$8 sps:$4 sm:$0xff]  }
 0x117   : > { %2260 = vmatprep.subr.bf16.mxu0 %v2625_v54  ;;  %v2568_v54 = vld [vmem:[#allocation5 + $0x170] ss:$8 sps:$4 sm:$0xff]  }
 0x118   : > { %1299 = vmatpush1.bf16.msra.mxu1 %v2543_v38  ;;  %v2552_v38 = vld [vmem:[#allocation5 + $0x114] ss:$8 sps:$4 sm:$0xff]  }
 0x119   : > { %1300 = vmatprep.subr.bf16.mxu1 %v2544_v39 }
 0x11a   : > { %2261 = vmatpush3.bf16.msra.mxu0 %v2626_v60  ;;  %v2577_v60 = vld [vmem:[#allocation5 + $0x1a0] ss:$8 sps:$4 sm:$0xff]  }
 0x11c   : > { %1301 = vmatpush1.bf16.msra.mxu1 %v2546_v40 }
 0x11d   : > { %1311 = vmatprep.subr.bf16.mxu1 %v2549_v41 }
 0x1df   : > { %v696_v47 = vpop.f32.mrb[0].mxu0 }
 0x1e0   : > { %v698_v48 = vpop.f32.mrb[1].mxu0  ;;  %v718_v51 = vrot.slane %v696_v47, 6 }
 0x1e1   : > { %v700_v49 = vpop.f32.mrb[2].mxu0  ;;  %v721_v55 = vrot.slane %v698_v48, 6 }
 0x1e2   : > { %v719_v52 = vrot.slane %v700_v49, 6  ;;  %v702_v53 = vpop.f32.mrb[3].mxu0 }
 0x1e3   : > { %v722_v56 = vrot.slane %v702_v53, 6 }
 0x1e4   : > { %v720_v57 = vsel %vm529_vm5, %v718_v51, %v719_v52  ;;  %v2567_v51 = vld [vmem:[#allocation5 + $0x164] ss:$8 sps:$4 sm:$0xff]   ;;  %v2565_v52 = vld [vmem:[#allocation5 + $0x160] ss:$8 sps:$4 sm:$0xff]  }
 0x1e5   : > { %v726_v58 = vmax.f32 %v696_v47, %v720_v57  ;;  %v723_v59 = vsel %vm529_vm5, %v721_v55, %v722_v56  ;;  %v2561_v47 = vld [vmem:[#allocation5 + $0x144] ss:$8 sps:$4 sm:$0xff]   ;;  %v2571_v56 = vld [vmem:[#allocation5 + $0x180] ss:$8 sps:$4 sm:$0xff]   ;;  %v2576_v57 = vld [vmem:[#allocation5 + $0x194] ss:$8 sps:$4 sm:$0xff]  }
 0x1e6   : > { %v727_v61 = vmax.f32 %v698_v48, %v723_v59  ;;  %v2559_v48 = vld [vmem:[#allocation5 + $0x140] ss:$8 sps:$4 sm:$0xff]   ;;  %v2573_v55 = vld [vmem:[#allocation5 + $0x184] ss:$8 sps:$4 sm:$0xff]  }
 0x1e7   : > { %v2579_v59 = vld [vmem:[#allocation5 + $0x1a4] ss:$8 sps:$4 sm:$0xff]  }
 0x1e8   : > { %v738_v62 = vmax.f32 %v726_v58, %v727_v61  ;;  %v706_v63 = vpop.f32.mrb[4].mxu0  ;;  %v2574_v58 = vld [vmem:[#allocation5 + $0x190] ss:$8 sps:$4 sm:$0xff]   ;;  %v2582_v61 = vld [vmem:[#allocation5 + $0x1b4] ss:$8 sps:$4 sm:$0xff]  }
 0x1e9   : > { %v730_v4 = vrot.slane %v706_v63, 6  ;;  %v708_v6 = vpop.f32.mrb[5].mxu0 }
 0x1ea   : > { %v731_v7 = vrot.slane %v708_v6, 6  ;;  %v710_v8 = vpop.f32.mrb[6].mxu0  ;;  %v745_v12 = vadd.f32 %v2120_v3, %v738_v62  ;;  %v2580_v62 = vld [vmem:[#allocation5 + $0x1b0] ss:$8 sps:$4 sm:$0xff]  }
 0x1eb   : > { %v734_v9 = vmax.f32 %v700_v49, %v730_v4  ;;  %v736_v11 = vmax.f32 %v706_v63, %v730_v4  ;;  %v711_v13 = vpop.f32.mrb[7].mxu0  ;;  %v2564_v49 = vld [vmem:[#allocation5 + $0x154] ss:$8 sps:$4 sm:$0xff]   ;;  %v2585_v63 = vld [vmem:[#allocation5 + $0x1c4] ss:$8 sps:$4 sm:$0xff]  }
 0x1ec   : > { %v735_v14 = vmax.f32 %v702_v53, %v731_v7  ;;  %v737_v15 = vmax.f32 %v708_v6, %v731_v7  ;;  %v746_v17 = vmax.f32 %v745_v12, 0.0  ;;  %v2570_v53 = vld [vmem:[#allocation5 + $0x174] ss:$8 sps:$4 sm:$0xff]   ;;  %v2586_v6 = vld [vmem:[#allocation5 + $0x1d0] ss:$8 sps:$4 sm:$0xff]  }
 0x1ed   : > { %v2588_v4 = vld [vmem:[#allocation5 + $0x1d4] ss:$8 sps:$4 sm:$0xff]   ;;  %v2591_v7 = vld [vmem:[#allocation5 + $0x1e4] ss:$8 sps:$4 sm:$0xff]   ;;  %v2589_v8 = vld [vmem:[#allocation5 + $0x1e0] ss:$8 sps:$4 sm:$0xff]  }
 0x1ee   : > { %v747_v16 = vmax.f32 %v734_v9, %v735_v14  ;;  %v748_v0 = vmax.f32 %v736_v11, %v737_v15  ;;  %v767_v21 = vrot.slane %v746_v17, 5  ;;  %v774_v29 = vrot.slane %v746_v17, 6  ;;  %v2594_v9 = vld [vmem:[#allocation5 + $0x1f4] ss:$8 sps:$4 sm:$0xff]   ;;  %v2592_v11 = vld [vmem:[#allocation5 + $0x1f0] ss:$8 sps:$4 sm:$0xff]  }
 0x1ef   : > { %v757_v30 = vrot.slane %v746_v17, 1  ;;  %v765_v31 = vrot.slane %v746_v17, 2  ;;  %v2597_v12 = vld [vmem:[#allocation5 + $0x204] ss:$8 sps:$4 sm:$0xff]   ;;  %v2595_v13 = vld [vmem:[#allocation5 + $0x200] ss:$8 sps:$4 sm:$0xff]  }
 0x1f0   : > { %v749_v2 = vadd.f32 %v2120_v3, %v747_v16  ;;  %v750_v18 = vadd.f32 %v2120_v3, %v748_v0  ;;  %v2583_v3 = vld [vmem:[#allocation5 + $0x1c0] ss:$8 sps:$4 sm:$0xff]   ;;  %v2600_v15 = vld [vmem:[#allocation5 + $0x214] ss:$8 sps:$4 sm:$0xff]   ;;  %v2598_v16 = vld [vmem:[#allocation5 + $0x210] ss:$8 sps:$4 sm:$0xff]  }
 0x1f1   : > { %v2866_v0 = vmov 0  }
 0x1f2   : > { %v751_v19 = vmax.f32 %v749_v2, 0.0  ;;  %v752_v20 = vmax.f32 %v750_v18, 0.0  ;;  %v2601_v2 = vld [vmem:[#allocation5 + $0x220] ss:$8 sps:$4 sm:$0xff]   ;;  %v2606_v18 = vld [vmem:[#allocation5 + $0x234] ss:$8 sps:$4 sm:$0xff]  }
 0x1f4   : > { %v762_v5 = vrot.slane %v752_v20, 5  ;;  %v771_v22 = vrot.slane %v752_v20, 1  ;;  %v777_v23 = vrot.slane %v752_v20, 2  ;;  %v754_v24 = vrot.slane %v751_v19, 4  ;;  %v2609_v20 = vld [vmem:[#allocation5 + $0x244] ss:$8 sps:$4 sm:$0xff]  }
 0x1f5   : > { %v780_v10 = vsel %vm526_vm1, %v746_v17, %v751_v19  ;;  %v761_v25 = vrot.slane %v751_v19, 5  ;;  %v770_v26 = vrot.slane %v751_v19, 1  ;;  %v776_v27 = vrot.slane %v751_v19, 2  ;;  %v2603_v17 = vld [vmem:[#allocation5 + $0x224] ss:$8 sps:$4 sm:$0xff]  }
 0x1f6   : > { %v781_v28 = vsel %vm526_vm1, %v754_v24, %v767_v21  ;;  %v785_v36 = vpack.c.bf16 %v780_v10, %v780_v10  ;;  %v2604_v19 = vld [vmem:[#allocation5 + $0x230] ss:$8 sps:$4 sm:$0xff]   ;;  %v2607_v21 = vld [vmem:[#allocation5 + $0x240] ss:$8 sps:$4 sm:$0xff]   ;;  %v2618_v10 = vld [vmem:[#allocation5 + $0x274] ss:$8 sps:$4 sm:$0xff]  }
 0x1f7   : > { %v786_v32 = vpack.c.bf16 %v781_v28, %v781_v28  ;;  %v763_v33 = vsel %vm760_vm6, %v761_v25, %v762_v5  ;;  %v772_v34 = vsel %vm769_vm7, %v770_v26, %v771_v22  ;;  %v778_v35 = vsel %vm523_vm0, %v776_v27, %v777_v23  ;;  %v2612_v5 = vld [vmem:[#allocation5 + $0x254] ss:$8 sps:$4 sm:$0xff]   ;;  %v2610_v22 = vld [vmem:[#allocation5 + $0x250] ss:$8 sps:$4 sm:$0xff]   ;;  %v2615_v23 = vld [vmem:[#allocation5 + $0x264] ss:$8 sps:$4 sm:$0xff]  }
 0x1f8   : > { %v783_v37 = vsel %vm526_vm1, %v763_v33, %v774_v29  ;;  %v3193_v39 = vsel %vm526_vm1, %v757_v30, %v772_v34  ;;  %v3196_v40 = vsel %vm526_vm1, %v765_v31, %v778_v35  ;;  %v2613_v24 = vld [vmem:[#allocation5 + $0x260] ss:$8 sps:$4 sm:$0xff]   ;;  %v2616_v25 = vld [vmem:[#allocation5 + $0x270] ss:$8 sps:$4 sm:$0xff]  }
 0x1f9   : > { %1302 = vmatprep.mubr.bf16.mxu1 %v786_v32  ;;  %v788_v41 = vpack.c.bf16 %v783_v37, %v783_v37  ;;  %v787_v14 = vpack.c.bf16 %v3193_v39, %v3193_v39  ;;  %v789_v26 = vpack.c.bf16 %v3196_v40, %v3196_v40  ;;  %v2627_v27 = vld [vmem:[%s3358_s5 + $0x60] sm:$0xff]   ;;  %v2629_v29 = vld [vmem:[%s3358_s5 + $0x68] sm:$0xff]   ;;  %v2631_v31 = vld [vmem:[%s3358_s5 + $0x70] sm:$0xff]  }
 0x1fa   : > { %1303 = vmatmul.mubr.bf16.vlgmr.msra.gmra.mrb[0].mxu1 %v785_v36  ;;  %v2628_v28 = vld [vmem:[%s3358_s5 + $0x20] sm:$0xff]   ;;  %2262 = vmatprep.subr.bf16.mxu0 %v2627_v27  ;;  %v2630_v30 = vld [vmem:[%s3358_s5 + $0x28] sm:$0xff]   ;;  %v2632_v32 = vld [vmem:[%s3358_s5 + $0x30] sm:$0xff]  }
 0x1fb   : > { %1312 = vmatpush1.bf16.msra.mxu1 %v2547_v1  ;;  %1343 = vmatprep.mubr.bf16.mxu1 %v788_v41  ;;  %v2633_v1 = vld [vmem:[%s3358_s5 + $0x78] sm:$0xff]   ;;  %v2635_v34 = vld [vmem:[%s3358_s5 + $0xc0] sm:$0xff]  }
 0x1fc   : > { %1313 = vmatprep.subr.bf16.mxu1 %v2552_v38  ;;  %2263 = vmatpush3.bf16.msra.mxu0 %v2628_v28  ;;  %v2634_v33 = vld [vmem:[%s3358_s5 + $0x38] sm:$0xff]  }
 0x1fd   : > { %2264 = vmatprep.subr.bf16.mxu0 %v2629_v29  ;;  %v2659_v29 = vld [vmem:[#allocation8] sm:$0xff]  }
 0x1ff   : > { %1314 = vmatpush1.bf16.msra.mxu1 %v2550_v42 }
 0x200   : > { %1315 = vmatprep.subr.bf16.mxu1 %v2555_v43  ;;  %2265 = vmatpush3.bf16.msra.mxu0 %v2630_v30  ;;  %v2201_v43 = vld [vmem:[%s3357_s4] ss:$0 sm:$0xff] }
 0x201   : > { %2266 = vmatprep.subr.bf16.mxu0 %v2631_v31  ;;  %v2660_v31 = vld [vmem:[#allocation8 + $0x8] sm:$0xff]  }
 0x203   : > { %1316 = vmatpush1.bf16.msra.mxu1 %v2553_v44 }
 0x204   : > { %1317 = vmatprep.subr.bf16.mxu1 %v2558_v45  ;;  %2267 = vmatpush3.bf16.msra.mxu0 %v2632_v32  ;;  %v2661_v32 = vld [vmem:[#allocation8 + $0x10] sm:$0xff]  }
 0x205   : > { %2268 = vmatprep.subr.bf16.mxu0 %v2633_v1  ;;  %v2662_v1 = vld [vmem:[#allocation8 + $0x18] sm:$0xff]  }
 0x207   : > { %1318 = vmatpush1.bf16.msra.mxu1 %v2556_v46 }
 0x208   : > { %1319 = vmatprep.subr.bf16.mxu1 %v2561_v47  ;;  %2269 = vmatpush3.bf16.msra.mxu0 %v2634_v33  ;;  %v2663_v33 = vld [vmem:[#allocation8 + $0x20] sm:$0xff]  }
 0x209   : > { %2276 = vmatprep.subr.bf16.mxu0 %v2635_v34  ;;  %v2664_v34 = vld [vmem:[#allocation8 + $0x28] sm:$0xff]  }
 0x20b   : > { %1320 = vmatpush1.bf16.msra.mxu1 %v2559_v48 }
 0x20c   : > { %1321 = vmatprep.subr.bf16.mxu1 %v2564_v49 }
 0x20f   : > { %1322 = vmatpush1.bf16.msra.mxu1 %v2562_v50  ;;  %v2636_v50 = vld [vmem:[%s3358_s5 + $0x80] sm:$0xff]  }
 0x210   : > { %1323 = vmatprep.subr.bf16.mxu1 %v2567_v51 }
 0x213   : > { %1324 = vmatpush1.bf16.msra.mxu1 %v2565_v52  ;;  %v2637_v52 = vld [vmem:[%s3358_s5 + $0xc8] sm:$0xff]  }
 0x214   : > { %1325 = vmatprep.subr.bf16.mxu1 %v2570_v53 }
 0x217   : > { %1326 = vmatpush1.bf16.msra.mxu1 %v2568_v54  ;;  %v2638_v54 = vld [vmem:[%s3358_s5 + $0x88] sm:$0xff]  }
 0x218   : > { %1327 = vmatprep.subr.bf16.mxu1 %v2573_v55  ;;  %v2639_v55 = vld [vmem:[%s3358_s5 + $0xd0] sm:$0xff]  }
 0x21b   : > { %1328 = vmatpush1.bf16.msra.mxu1 %v2571_v56  ;;  %v2640_v56 = vld [vmem:[%s3358_s5 + $0x90] sm:$0xff]  }
 0x21c   : > { %1329 = vmatprep.subr.bf16.mxu1 %v2576_v57  ;;  %v2641_v57 = vld [vmem:[%s3358_s5 + $0xd8] sm:$0xff]  }
 0x21f   : > { %1330 = vmatpush1.bf16.msra.mxu1 %v2574_v58  ;;  %v2642_v58 = vld [vmem:[%s3358_s5 + $0x98] sm:$0xff]  }
 0x220   : > { %1331 = vmatprep.subr.bf16.mxu1 %v2579_v59  ;;  %v2643_v59 = vld [vmem:[%s3358_s5 + $0xe0] sm:$0xff]  }
 0x223   : > { %1332 = vmatpush1.bf16.msra.mxu1 %v2577_v60  ;;  %v2644_v60 = vld [vmem:[%s3358_s5 + $0xa0] sm:$0xff]  }
 0x224   : > { %1333 = vmatprep.subr.bf16.mxu1 %v2582_v61  ;;  %v2645_v61 = vld [vmem:[%s3358_s5 + $0xe8] sm:$0xff]  }
 0x227   : > { %1334 = vmatpush1.bf16.msra.mxu1 %v2580_v62  ;;  %v2646_v62 = vld [vmem:[%s3358_s5 + $0xa8] sm:$0xff]  }
 0x228   : > { %1335 = vmatprep.subr.bf16.mxu1 %v2585_v63  ;;  %v2647_v63 = vld [vmem:[%s3358_s5 + $0xf0] sm:$0xff]  }
 0x22b   : > { %1336 = vmatpush1.bf16.msra.mxu1 %v2583_v3  ;;  %v2648_v3 = vld [vmem:[%s3358_s5 + $0xb0] sm:$0xff]  }
 0x22c   : > { %1337 = vmatprep.subr.bf16.mxu1 %v2588_v4  ;;  %v2649_v4 = vld [vmem:[%s3358_s5 + $0xf8] sm:$0xff]  }
 0x22f   : > { %1338 = vmatpush1.bf16.msra.mxu1 %v2586_v6  ;;  %v2650_v6 = vld [vmem:[%s3358_s5 + $0xb8] sm:$0xff]  }
 0x230   : > { %1339 = vmatprep.subr.bf16.mxu1 %v2591_v7 }
 0x233   : > { %1340 = vmatpush1.bf16.msra.mxu1 %v2589_v8 }
 0x234   : > { %1341 = vmatprep.subr.bf16.mxu1 %v2594_v9  ;;  %v2651_v9 = vld [vmem:[#allocation7] sm:$0xff]  }
 0x237   : > { %1342 = vmatpush1.bf16.msra.mxu1 %v2592_v11  ;;  %v2867_v11 = vmov 0.0  }
 0x238   : > { %1352 = vmatprep.subr.bf16.mxu1 %v2597_v12  ;;  %v2652_v12 = vld [vmem:[#allocation7 + $0x8] sm:$0xff]  }
 0x23a   : > { %1344 = vmatmul.mubr.bf16.vlgmr.msra.gmra.mrb[0].mxu1 %v787_v14  ;;  %v2654_v14 = vld [vmem:[#allocation7 + $0x18] sm:$0xff]  }
 0x23b   : > { %1353 = vmatpush1.bf16.msra.mxu1 %v2595_v13  ;;  %1384 = vmatprep.mubr.bf16.mxu1 %v2866_v0  ;;  %v2653_v13 = vld [vmem:[#allocation7 + $0x10] sm:$0xff]  }
 0x23c   : > { %1354 = vmatprep.subr.bf16.mxu1 %v2600_v15  ;;  %v2655_v15 = vld [vmem:[#allocation7 + $0x20] sm:$0xff]   ;;  %v2657_v0 = vld [vmem:[#allocation7 + $0x30] sm:$0xff]  }
 0x23f   : > { %1355 = vmatpush1.bf16.msra.mxu1 %v2598_v16  ;;  %v2656_v16 = vld [vmem:[#allocation7 + $0x28] sm:$0xff]  }
 0x240   : > { %1356 = vmatprep.subr.bf16.mxu1 %v2603_v17  ;;  %v2658_v17 = vld [vmem:[#allocation7 + $0x38] sm:$0xff]  }
 0x243   : > { %1357 = vmatpush1.bf16.msra.mxu1 %v2601_v2 }
 0x244   : > { %1358 = vmatprep.subr.bf16.mxu1 %v2606_v18 }
 0x247   : > { %1359 = vmatpush1.bf16.msra.mxu1 %v2604_v19 }
 0x248   : > { %1360 = vmatprep.subr.bf16.mxu1 %v2609_v20 }
 0x24b   : > { %1361 = vmatpush1.bf16.msra.mxu1 %v2607_v21 }
 0x24c   : > { %1362 = vmatprep.subr.bf16.mxu1 %v2612_v5  ;;  %v1486_v5 = vld [vmem:[%s3359_s6] sm:$0x1] }
 0x24f   : > { %1363 = vmatpush1.bf16.msra.mxu1 %v2610_v22 }
 0x250   : > { %1364 = vmatprep.subr.bf16.mxu1 %v2615_v23 }
 0x253   : > { %1365 = vmatpush1.bf16.msra.mxu1 %v2613_v24 }
 0x254   : > { %1366 = vmatprep.subr.bf16.mxu1 %v2618_v10 }
 0x257   : > { %1367 = vmatpush1.bf16.msra.mxu1 %v2616_v25 }
 0x25a   : > { %1385 = vmatmul.mubr.bf16.vlgmr.msra.gmra.mrb[0].mxu1 %v789_v26 }
 0x32d   : > { %v1386_v35 = vpop.f32.mrb[0].mxu1 }
 0x32e   : > { %v1395_v36 = vrot.slane %v1386_v35, 4  ;;  %v1388_v37 = vpop.f32.mrb[1].mxu1 }
 0x32f   : > { %v1396_v38 = vrot.slane %v1388_v37, 4  ;;  %v1390_v39 = vpop.f32.mrb[2].mxu1 }
 0x330   : > { %v1399_v40 = vmax.f32 %v1386_v35, %v1395_v36  ;;  %v1391_v41 = vpop.f32.mrb[3].mxu1  ;;  %v2665_v35 = vld [vmem:[#allocation8 + $0x30] sm:$0xff]   ;;  %v2666_v36 = vld [vmem:[#allocation8 + $0x38] sm:$0xff]  }
 0x331   : > { %v1400_v42 = vmax.f32 %v1388_v37, %v1396_v38  ;;  %v1777_v37 = vld [vmem:[%s3361_s8] sm:$0x1] }
 0x333   : > { %v1401_v44 = vmax.f32 %v1399_v40, %v1400_v42 }
 0x335   : > { %v1409_v45 = vadd.f32 %v2201_v43, %v1401_v44 }
 0x337   : > { %v1410_v46 = vmax.f32 %v1409_v45, 0.0  ;;  %v1884_v45 = vld [vmem:[%s3363_s10] sm:$0x1] }
 0x339   : > { %v1412_v47 = vrot.slane %v1410_v46, 1  ;;  %v1416_v48 = vrot.slane %v1410_v46, 3  ;;  %v1418_v51 = vpack.c.bf16 %v1410_v46, %v1410_v46  ;;  %v1414_v7 = vrot.slane %v1410_v46, 2 }
 0x33b   : > { %v1419_v49 = vpack.c.bf16 %v1412_v47, %v1412_v47  ;;  %v1421_v53 = vpack.c.bf16 %v1416_v48, %v1416_v48  ;;  %v1420_v8 = vpack.c.bf16 %v1414_v7, %v1414_v7 }
 0x33d   : > { %1711 = vmatprep.mubr.bf16.mxu0 %v1419_v49 }
 0x33e   : > { %1712 = vmatmul.mubr.bf16.vlgmr.msra.gmra.mrb[8].mxu0 %v1418_v51 }
 0x33f   : > { %2277 = vmatpush3.bf16.msra.mxu0 %v2636_v50  ;;  %1751 = vmatprep.mubr.bf16.mxu0 %v1421_v53 }
 0x340   : > { %2278 = vmatprep.subr.bf16.mxu0 %v2637_v52 }
 0x343   : > { %2279 = vmatpush3.bf16.msra.mxu0 %v2638_v54 }
 0x344   : > { %2280 = vmatprep.subr.bf16.mxu0 %v2639_v55 }
 0x347   : > { %2281 = vmatpush3.bf16.msra.mxu0 %v2640_v56 }
 0x348   : > { %2282 = vmatprep.subr.bf16.mxu0 %v2641_v57 }
 0x34b   : > { %2283 = vmatpush3.bf16.msra.mxu0 %v2642_v58 }
 0x34c   : > { %2284 = vmatprep.subr.bf16.mxu0 %v2643_v59 }
 0x34f   : > { %2285 = vmatpush3.bf16.msra.mxu0 %v2644_v60 }
 0x350   : > { %2286 = vmatprep.subr.bf16.mxu0 %v2645_v61 }
 0x353   : > { %2287 = vmatpush3.bf16.msra.mxu0 %v2646_v62 }
 0x354   : > { %2288 = vmatprep.subr.bf16.mxu0 %v2647_v63 }
 0x357   : > { %2289 = vmatpush3.bf16.msra.mxu0 %v2648_v3 }
 0x358   : > { %2290 = vmatprep.subr.bf16.mxu0 %v2649_v4 }
 0x35b   : > { %2291 = vmatpush3.bf16.msra.mxu0 %v2650_v6 }
 0x35c   : > { %2316 = vmatprep.subr.bf16.mxu0 %v2867_v11 }
 0x35e   : > { %1752 = vmatmul.mubr.bf16.vlgmr.msra.gmra.mrb[12].mxu0 %v1420_v8 }
 0x35f   : > { %2317 = vmatpush3.bf16.msra.mxu0 %v2651_v9  ;;  %2332 = vmatprep.mubr.msk.bf16.mxu0 %vm2868_vm8, %v2867_v11 }
 0x360   : > { %2318 = vmatprep.subr.bf16.mxu0 %v2867_v11 }
 0x363   : > { %2319 = vmatpush3.bf16.msra.mxu0 %v2652_v12 }
 0x364   : > { %2320 = vmatprep.subr.bf16.mxu0 %v2867_v11 }
 0x367   : > { %2321 = vmatpush3.bf16.msra.mxu0 %v2653_v13 }
 0x368   : > { %2322 = vmatprep.subr.bf16.mxu0 %v2867_v11 }
 0x36b   : > { %2323 = vmatpush3.bf16.msra.mxu0 %v2654_v14 }
 0x36c   : > { %2324 = vmatprep.subr.bf16.mxu0 %v2867_v11 }
 0x36f   : > { %2325 = vmatpush3.bf16.msra.mxu0 %v2655_v15 }
 0x370   : > { %2326 = vmatprep.subr.bf16.mxu0 %v2867_v11 }
 0x373   : > { %2327 = vmatpush3.bf16.msra.mxu0 %v2656_v16 }
 0x374   : > { %2328 = vmatprep.subr.bf16.mxu0 %v2867_v11 }
 0x377   : > { %2329 = vmatpush3.bf16.msra.mxu0 %v2657_v0 }
 0x378   : > { %2330 = vmatprep.subr.bf16.mxu0 %v2867_v11 }
 0x37b   : > { %2331 = vmatpush3.bf16.msra.mxu0 %v2658_v17 }
 0x37c   : > { %2336 = vmatprep.subr.bf16.mxu0 %v2867_v11 }
 0x411   : > { %v2270_v2 = vpop.f32.mrb[8].mxu0 }
 0x412   : > { %v2271_v18 = vpop.f32.mrb[9].mxu0 }
 0x413   : > { %v2272_v19 = vadd.f32 %v2271_v18, %v2270_v2  ;;  %v2273_v20 = vpop.f32.mrb[10].mxu0 }
 0x414   : > { %v2274_v21 = vpop.f32.mrb[11].mxu0 }
 0x415   : > { %v1714_v24 = vadd.f32 %v2272_v19, %v1486_v5 }
 0x431   : > { %v2292_v22 = vpop.f32.mrb[12].mxu0 }
 0x432   : > { %v2293_v23 = vpop.f32.mrb[13].mxu0 }
 0x433   : > { %v2294_v10 = vadd.f32 %v2293_v23, %v2292_v22  ;;  %v2295_v25 = vpop.f32.mrb[14].mxu0 }
 0x434   : > { %v2296_v26 = vpop.f32.mrb[15].mxu0 }
 0x435   : > { %v1754_v27 = vadd.f32 %v2294_v10, %v1714_v24 }
 0x437   : > { %v1759_v28 = vmax.f32 %v1754_v27, 0.0 }
 0x439   : > { %v1760_v30 = vpack.c.bf16 %v1759_v28, %v1759_v28 }
 0x43b   : > { %2333 = vmatmul.mubr.bf16.vlgmr.msra.gmra.mrb[16].mxu0 %v1760_v30 }
 0x43c   : > { %2337 = vmatpush3.bf16.msra.mxu0 %v2659_v29  ;;  %2352 = vmatprep.mubr.msk.bf16.mxu0 %vm2868_vm8, %v2867_v11 }
 0x43d   : > { %2338 = vmatprep.subr.bf16.mxu0 %v2867_v11 }
 0x440   : > { %2339 = vmatpush3.bf16.msra.mxu0 %v2660_v31 }
 0x441   : > { %2340 = vmatprep.subr.bf16.mxu0 %v2867_v11 }
 0x444   : > { %2341 = vmatpush3.bf16.msra.mxu0 %v2661_v32 }
 0x445   : > { %2342 = vmatprep.subr.bf16.mxu0 %v2867_v11 }
 0x448   : > { %2343 = vmatpush3.bf16.msra.mxu0 %v2662_v1 }
 0x449   : > { %2344 = vmatprep.subr.bf16.mxu0 %v2867_v11 }
 0x44c   : > { %2345 = vmatpush3.bf16.msra.mxu0 %v2663_v33 }
 0x44d   : > { %2346 = vmatprep.subr.bf16.mxu0 %v2867_v11 }
 0x450   : > { %2347 = vmatpush3.bf16.msra.mxu0 %v2664_v34 }
 0x451   : > { %2348 = vmatprep.subr.bf16.mxu0 %v2867_v11 }
 0x454   : > { %2349 = vmatpush3.bf16.msra.mxu0 %v2665_v35 }
 0x455   : > { %2350 = vmatprep.subr.bf16.mxu0 %v2867_v11 }
 0x458   : > { %2351 = vmatpush3.bf16.msra.mxu0 %v2666_v36 }
 0x50e   : > { %v1860_v38 = vpop.f32.mrb[16].mxu0 }
 0x50f   : > { %v1861_v39 = vadd.f32 %v1860_v38, %v1777_v37  ;;  %v2334_v40 = vpop.f32.mrb[17].mxu0 }
 0x510   : > { %v1863_v41 = vpop.f32.mrb[18].mxu0 }
 0x511   : > { %v1866_v42 = vmax.f32 %v1861_v39, 0.0  ;;  %v2335_v43 = vpop.f32.mrb[19].mxu0 }
 0x513   : > { %v1867_v44 = vpack.c.bf16 %v1866_v42, %v1866_v42 }
 0x515   : > { %2353 = vmatmul.mubr.bf16.vlgmr.msra.gmra.mrb[20].mxu0 %v1867_v44 }
 0x5e8   : > { %v1967_v46 = vpop.f32.mrb[20].mxu0 }
 0x5e9   : > { %v1968_v47 = vadd.f32 %v1967_v46, %v1884_v45  ;;  %v2354_v48 = vpop.f32.mrb[21].mxu0 }
 0x5ea   : > { %v1970_v49 = vpop.f32.mrb[22].mxu0 }
 0x5eb   : > { %1973 = vst [vmem:[%s437_s11] sm:$0x1] %v1968_v47  ;;  %v2355_v50 = vpop.f32.mrb[23].mxu0 }
 0x5ec   : > { %2792 = shalt.err (!%p2789_p10)
}
 0x5ed   : > { %s2793_s30 = scalar_lea.hbm %s3311_s24, 16  ;;  %s2797_s19 = scalar_lea.hbm %s3394_s15, 32 }
 0x5ee   : > { %p2794_p0 = scmp.ne.s32.totalorder %s3311_s24, %s2793_s30  ;;  %p2798_p4 = scmp.lt.u32.totalorder %s3311_s24, %s3394_s15 }
 0x5ef   : > { %p2799_p12 = scmp.lt.u32.totalorder %s2797_s19, %s2793_s30  ;;  %p2801_p8 = scmp.lt.u32.totalorder %s2793_s30, %s3311_s24 }
 0x5f0   : > { %p2795_p2 = pnand %p2794_p0, %p3395_p11 }
 0x5f1   : > { %p2800_p7 = por %p2799_p12, %p2798_p4 }
 0x5f2   : > { %p2796_p3 = pneg %p2795_p2 }
 0x5f3   : > { %p2802_p13 = por %p2801_p8, %p2800_p7 }
 0x5f5   : > { %p2803_p1 = pnand %p2802_p13, %p2796_p3 }
 0x5f7   : > { %2806 = shalt.err (!%p2803_p1)
}
 0x5f8   : > { %2380 = dma.vmem_to_hbm [thread:$0]  (%p3395_p11), %s3313_s23, 16, %s3311_s24, %s1975_s17  }
 0x5f9 PF: > { %s3396_s26 = sld [smem:[#allocation17_spill]]  ;;  %s3397_s11 = sld [smem:[#allocation15_spill]] }
 0x5fa   : > { %s3398_s29 = sld [smem:[#allocation20_spill]] }
 0x5ff   : > { %p2407_p6 = scmp.ge.s32.totalorder %s3396_s26, 2  ;;  %s1999_s13 = sand.u32 1, %s3397_s11  }
 0x600   : > { %p3399_p9 = scmp.ne.s32.totalorder %s3398_s29, 0  ;;  %s2000_s21 = scalar_lea.sflag [#allocation4], %s1999_s13 }
 0x602   : > { %p2396_p5 = pnand %p2407_p6, %p3399_p9 }
 0x604   : > { %2836 = dma.done.wait (!%p2396_p5), %s2000_s21, 16  }
 0x605   : > { %2838 = vsyncadd (!%p2396_p5), %s2000_s21, 4294967280  ;;  %s3400_s20 = sld [smem:[#allocation18_spill]]  ;;  %s3401_s28 = sld [smem:[#allocation16_spill]] }
 0x606   : > { %s3402_s19 = sld [smem:[#allocation19_spill]]  ;;  %s3403_s17 = smov %s2845_s18 }
 0x60b   : > { %p24_p10 = scmp.ge.s32.totalorder %s3400_s20, 4   ;;  %s3404_s18 = smov %s3401_s28 }
 0x60d   :  { %26 = sbr.rel (!%p24_p10) target bundleno = 8 (0x8), region = 116 }
 0x614   :  { %2004 = vsyncpa [#allocation3], 1 }
 0x615   :  { %2006 = vsyncpa [#allocation3 + $0x1], 1 }
 0x616   :  { %2007 = vsyncpa [#allocation6], 1 }
 0x617   :  { %2008 = vsyncpa [#allocation9], 1 }
 0x618   :  { %2009 = vsyncpa [#allocation4], 1 }
 0x619   :  { %2011 = vsyncpa [#allocation4 + $0x1], 1 }

</bundles_post_ra>
